<compile_context>
chip_gen: v5e
topology: v5e:2x2
jax: 0.10.0
libtpu: 0.0.40
codegen_flags: <defaults>
</compile_context>

<pallas_src>
from math import sqrt

import jax
import jax.numpy as jnp
from jax.experimental import pallas as pl
from jax.experimental.pallas import tpu as pltpu


def _make_kernel(TQ, TK, H, DH, E):
    scale = 1.0 / sqrt(DH)
    NEG_INF = float("-inf")

    def kernel(xq_ref, xkv_ref, wq_ref, bq_ref, wkv_ref, bkv_ref, wo_ref, bo_ref,
               out_ref, q_sc, m_sc, l_sc, acc_sc):
        qi = pl.program_id(1)
        ki = pl.program_id(2)
        nk = pl.num_programs(2)
        q_start = qi * TQ
        k_start = ki * TK

        @pl.when(ki == 0)
        def _init():
            # Fused Q projection for this query tile: ONE wide matmul, reused for
            # every kv step (kv axis is innermost, block index is constant).
            q = jnp.dot(xq_ref[0], wq_ref[...], preferred_element_type=jnp.float32)
            q_sc[...] = (q + bq_ref[...]).astype(q_sc.dtype)
            m_sc[...] = jnp.full((H, TQ, 1), NEG_INF, jnp.float32)
            l_sc[...] = jnp.zeros((H, TQ, 1), jnp.float32)
            acc_sc[...] = jnp.zeros((H, TQ, DH), jnp.float32)

        # Skip kv tiles that are entirely in the causal future of this q tile.
        @pl.when(k_start <= q_start + TQ - 1)
        def _update():
            # Fused K/V projection for this kv tile: ONE (TK,E)x(E,2E) matmul.
            kv = jnp.dot(xkv_ref[0], wkv_ref[...], preferred_element_type=jnp.float32)
            kv = (kv + bkv_ref[...]).astype(jnp.bfloat16)          # (TK, 2E)

            # Per-tile causal mask from tile offsets (never the full (S,S) mask).
            row = q_start + jax.lax.broadcasted_iota(jnp.int32, (TQ, TK), 0)
            col = k_start + jax.lax.broadcasted_iota(jnp.int32, (TQ, TK), 1)
            causal = col <= row

            for h in range(H):                                     # static unroll
                qh = q_sc[:, h * DH:(h + 1) * DH]                  # (TQ, DH) bf16
                kh = kv[:, h * DH:(h + 1) * DH]                    # (TK, DH) bf16
                vh = kv[:, E + h * DH:E + (h + 1) * DH]            # (TK, DH) bf16

                s = jnp.dot(qh, kh.T, preferred_element_type=jnp.float32) * scale
                s = jnp.where(causal, s, NEG_INF)

                m_prev = m_sc[h]                                   # (TQ, 1) f32
                m_new = jnp.maximum(m_prev, jnp.max(s, axis=-1, keepdims=True))
                alpha = jnp.exp(m_prev - m_new)
                p = jnp.exp(s - m_new)                             # (TQ, TK) f32
                l_sc[h] = alpha * l_sc[h] + jnp.sum(p, axis=-1, keepdims=True)
                acc_sc[h] = alpha * acc_sc[h] + jnp.dot(
                    p.astype(jnp.bfloat16), vh, preferred_element_type=jnp.float32)
                m_sc[h] = m_new

        @pl.when(ki == nk - 1)
        def _finalize():
            # Output linear applied per head and summed (== concat @ Wo), keeping
            # all stores lane-dense (TQ, E); no per-head concat copies.
            out = jnp.zeros((TQ, E), jnp.float32)
            for h in range(H):
                inv_l = pl.reciprocal(l_sc[h], approx=True)        # EUP, ~free
                attn_h = (acc_sc[h] * inv_l).astype(jnp.bfloat16)  # (TQ, DH)
                out = out + jnp.dot(attn_h, wo_ref[h],
                                    preferred_element_type=jnp.float32)
            out_ref[0] = (out + bo_ref[...]).astype(out_ref.dtype)

    return kernel


def multi_head_attention(x, params, *, block_q=128, block_k=128):
    B, S, E = x.shape
    H, E_in, DH = params['wq'].shape
    assert E_in == E and H * DH == E

    TQ = min(block_q, S)
    TK = min(block_k, S)
    assert S % TQ == 0 and S % TK == 0, "sequence length must divide the tile sizes"
    nq, nk = S // TQ, S // TK

    bf16, f32 = jnp.bfloat16, jnp.float32

    def fuse(w):  # (H, E, DH) input-major -> (E, H*DH), head-major output columns
        return jnp.transpose(w, (1, 0, 2)).reshape(E, H * DH)

    # bf16 MXU operands; biases stay f32 (added to f32 accumulators).
    wq_f = fuse(params['wq']).astype(bf16)                                  # (E, E)
    wkv_f = jnp.concatenate([fuse(params['wk']), fuse(params['wv'])],
                            axis=1).astype(bf16)                            # (E, 2E)
    bq_f = params['bq'].reshape(1, E).astype(f32)
    bkv_f = jnp.concatenate([params['bk'].reshape(1, E),
                             params['bv'].reshape(1, E)], axis=1).astype(f32)
    wo_h = params['wo'].reshape(H, DH, E).astype(bf16)                      # per-head Wo
    bo_f = params['bo'].reshape(1, E).astype(f32)
    x_bf = x.astype(bf16)

    kernel = _make_kernel(TQ, TK, H, DH, E)

    def build(single_buffer_weights):
        kw = {"pipeline_mode": pl.Buffered(1)} if single_buffer_weights else {}

        def const_spec(shape):
            return pl.BlockSpec(shape, lambda b, qi, ki: (0,) * len(shape), **kw)

        grid_spec = pltpu.PrefetchScalarGridSpec(
            num_scalar_prefetch=0,
            grid=(B, nq, nk),
            in_specs=[
                pl.BlockSpec((1, TQ, E), lambda b, qi, ki: (b, qi, 0)),   # x (q tile)
                pl.BlockSpec((1, TK, E), lambda b, qi, ki: (b, ki, 0)),   # x (kv tile)
                const_spec((E, E)),          # fused Wq
                const_spec((1, E)),          # fused bq
                const_spec((E, 2 * E)),      # fused Wk|Wv
                const_spec((1, 2 * E)),      # fused bk|bv
                const_spec((H, DH, E)),      # Wo split per head
                const_spec((1, E)),          # bo
            ],
            out_specs=pl.BlockSpec((1, TQ, E), lambda b, qi, ki: (b, qi, 0)),
            scratch_shapes=[
                pltpu.VMEM((TQ, E), bf16),       # projected q tile (resident over kv)
                pltpu.VMEM((H, TQ, 1), f32),     # m (running max)
                pltpu.VMEM((H, TQ, 1), f32),     # l (running denom)
                pltpu.VMEM((H, TQ, DH), f32),    # acc (running numerator)
            ],
        )
        return pl.pallas_call(
            kernel,
            out_shape=jax.ShapeDtypeStruct((B, S, E), x.dtype),
            grid_spec=grid_spec,
            compiler_params=pltpu.CompilerParams(
                dimension_semantics=("parallel", "parallel", "arbitrary"),
                vmem_limit_bytes=64 * 1024 * 1024,
            ),
        )

    args = (x_bf, x_bf, wq_f, bq_f, wkv_f, bkv_f, wo_h, bo_f)
    try:
        return build(True)(*args)
    except Exception:
        # TODO(synk): pl.Buffered(1) single-buffering of invariant weights is not
        # accepted by this jax/Mosaic version; fall back to default buffering.
        return build(False)(*args)


def reference_mha(x, params):
    """Pure-JAX (f32) reference mirroring the PyTorch module semantics."""
    H, E, DH = params['wq'].shape
    S = x.shape[1]
    q = jnp.einsum('bse,hed->bhsd', x, params['wq']) + params['bq'][None, :, None, :]
    k = jnp.einsum('bse,hed->bhsd', x, params['wk']) + params['bk'][None, :, None, :]
    v = jnp.einsum('bse,hed->bhsd', x, params['wv']) + params['bv'][None, :, None, :]
    scores = jnp.einsum('bhsd,bhtd->bhst', q, k) / sqrt(DH)
    mask = jnp.tril(jnp.ones((S, S)))
    scores = jnp.where(mask[None, None] == 0, -jnp.inf, scores)
    w = jax.nn.softmax(scores, axis=-1)
    attn = jnp.einsum('bhst,bhtd->bhsd', w, v)                 # (B, H, S, Dh)
    concat = jnp.swapaxes(attn, 1, 2).reshape(x.shape[0], S, E)
    return concat @ params['wo'] + params['bo']


if __name__ == "__main__":
    B, S, E, H = 2, 8, 32, 4
    DH = E // H

    key = jax.random.PRNGKey(0)
    keys = jax.random.split(key, 10)
    scale = 0.05
    params = {
        'wq': scale * jax.random.normal(keys[0], (H, E, DH), jnp.float32),
        'bq': scale * jax.random.normal(keys[1], (H, DH), jnp.float32),
        'wk': scale * jax.random.normal(keys[2], (H, E, DH), jnp.float32),
        'bk': scale * jax.random.normal(keys[3], (H, DH), jnp.float32),
        'wv': scale * jax.random.normal(keys[4], (H, E, DH), jnp.float32),
        'bv': scale * jax.random.normal(keys[5], (H, DH), jnp.float32),
        'wo': scale * jax.random.normal(keys[6], (E, E), jnp.float32),
        'bo': scale * jax.random.normal(keys[7], (E,), jnp.float32),
    }
    x = jax.random.normal(keys[8], (B, S, E), jnp.float32)

    out = multi_head_attention(x, params)
    out = jax.block_until_ready(out)

    ref = reference_mha(x, params)
    assert out.shape == (B, S, E)
    max_err = float(jnp.max(jnp.abs(out - ref)))
    # bf16 MXU operands + approx reciprocal -> loosened tolerance vs f32 reference.
    assert jnp.allclose(out, ref, atol=2e-2, rtol=2e-2), f"mismatch vs reference ({max_err})"

    print("KERNEL_OK")
</pallas_src>

<mosaic_0001>
module attributes {stable_mosaic.version = 11 : i64} {
  func.func @kernel(%arg0: i32, %arg1: i32, %arg2: i32, %arg3: memref<1x8x32xbf16, #tpu.memory_space<vmem>>, %arg4: memref<1x8x32xbf16, #tpu.memory_space<vmem>>, %arg5: memref<32x32xbf16, #tpu.memory_space<vmem>>, %arg6: memref<1x32xf32, #tpu.memory_space<vmem>>, %arg7: memref<32x64xbf16, #tpu.memory_space<vmem>>, %arg8: memref<1x64xf32, #tpu.memory_space<vmem>>, %arg9: memref<4x8x32xbf16, #tpu.memory_space<vmem>>, %arg10: memref<1x32xf32, #tpu.memory_space<vmem>>, %arg11: memref<1x8x32xf32, #tpu.memory_space<vmem>>, %arg12: memref<8x32xbf16, #tpu.memory_space<vmem>>, %arg13: memref<4x8x1xf32, #tpu.memory_space<vmem>>, %arg14: memref<4x8x1xf32, #tpu.memory_space<vmem>>, %arg15: memref<4x8x8xf32, #tpu.memory_space<vmem>>) attributes {dimension_semantics = [#tpu.dimension_semantics<parallel>, #tpu.dimension_semantics<parallel>, #tpu.dimension_semantics<arbitrary>], iteration_bounds = array<i64: 2, 1, 1>, scalar_prefetch = 0 : i64, scratch_operands = 4 : i64, tpu.core_type = #tpu.core_type<tc>, window_params = [{transform_indices = @transform_0, window_bounds = array<i64: 1, 8, 32>}, {transform_indices = @transform_1, window_bounds = array<i64: 1, 8, 32>}, {pipeline_mode = #tpu.pipeline_mode<synchronous>, transform_indices = @transform_2, window_bounds = array<i64: 32, 32>}, {pipeline_mode = #tpu.pipeline_mode<synchronous>, transform_indices = @transform_3, window_bounds = array<i64: 1, 32>}, {pipeline_mode = #tpu.pipeline_mode<synchronous>, transform_indices = @transform_4, window_bounds = array<i64: 32, 64>}, {pipeline_mode = #tpu.pipeline_mode<synchronous>, transform_indices = @transform_5, window_bounds = array<i64: 1, 64>}, {pipeline_mode = #tpu.pipeline_mode<synchronous>, transform_indices = @transform_6, window_bounds = array<i64: 4, 8, 32>}, {pipeline_mode = #tpu.pipeline_mode<synchronous>, transform_indices = @transform_7, window_bounds = array<i64: 1, 32>}, {transform_indices = @transform_8, window_bounds = array<i64: 1, 8, 32>}]} {
    %c8_i32 = arith.constant 8 : i32
    %0 = arith.muli %arg1, %c8_i32 : i32
    %c8_i32_0 = arith.constant 8 : i32
    %1 = arith.muli %arg2, %c8_i32_0 : i32
    %c0_i32 = arith.constant 0 : i32
    %2 = arith.cmpi eq, %arg2, %c0_i32 : i32
    %3 = arith.extui %2 : i1 to i32
    %c0_i32_1 = arith.constant 0 : i32
    %4 = arith.cmpi ne, %3, %c0_i32_1 : i32
    scf.if %4 {
      %c0 = arith.constant 0 : index
      %c0_6 = arith.constant 0 : index
      %c0_7 = arith.constant 0 : index
      %13 = vector.load %arg3[%c0, %c0_6, %c0_7] : memref<1x8x32xbf16, #tpu.memory_space<vmem>>, vector<1x8x32xbf16>
      %14 = vector.shape_cast %13 : vector<1x8x32xbf16> to vector<8x32xbf16>
      %c0_8 = arith.constant 0 : index
      %c0_9 = arith.constant 0 : index
      %15 = vector.load %arg5[%c0_8, %c0_9] : memref<32x32xbf16, #tpu.memory_space<vmem>>, vector<32x32xbf16>
      %cst = arith.constant dense<0.000000e+00> : vector<8x32xf32>
      %16 = tpu.matmul %14, %15, %cst {dimension_numbers = #tpu.dot_dimension_numbers<[1], [0], [0], [1], [0, 0, 1, 1], [], []>} : vector<8x32xbf16>, vector<32x32xbf16>, vector<8x32xf32> -> vector<8x32xf32>
      %c0_10 = arith.constant 0 : index
      %c0_11 = arith.constant 0 : index
      %17 = vector.load %arg6[%c0_10, %c0_11] : memref<1x32xf32, #tpu.memory_space<vmem>>, vector<1x32xf32>
      %18 = vector.broadcast %17 : vector<1x32xf32> to vector<8x32xf32>
      %19 = arith.addf %16, %18 : vector<8x32xf32>
      %20 = arith.truncf %19 : vector<8x32xf32> to vector<8x32xbf16>
      %c0_12 = arith.constant 0 : index
      %c0_13 = arith.constant 0 : index
      %21 = vector.load %arg12[%c0_12, %c0_13] : memref<8x32xbf16, #tpu.memory_space<vmem>>, vector<8x32xbf16>
      tpu.vector_store %arg12[%c0_12, %c0_13], %20 {strides = array<i32>} : memref<8x32xbf16, #tpu.memory_space<vmem>>, vector<8x32xbf16>,
      %cst_14 = arith.constant 0xFF800000 : f32
      %22 = vector.broadcast %cst_14 : f32 to vector<4x8x1xf32>
      %c0_15 = arith.constant 0 : index
      %c0_16 = arith.constant 0 : index
      %c0_17 = arith.constant 0 : index
      %23 = vector.load %arg13[%c0_15, %c0_16, %c0_17] : memref<4x8x1xf32, #tpu.memory_space<vmem>>, vector<4x8x1xf32>
      tpu.vector_store %arg13[%c0_15, %c0_16, %c0_17], %22 {strides = array<i32>} : memref<4x8x1xf32, #tpu.memory_space<vmem>>, vector<4x8x1xf32>,
      %cst_18 = arith.constant 0.000000e+00 : f32
      %24 = vector.broadcast %cst_18 : f32 to vector<4x8x1xf32>
      %c0_19 = arith.constant 0 : index
      %c0_20 = arith.constant 0 : index
      %c0_21 = arith.constant 0 : index
      %25 = vector.load %arg14[%c0_19, %c0_20, %c0_21] : memref<4x8x1xf32, #tpu.memory_space<vmem>>, vector<4x8x1xf32>
      tpu.vector_store %arg14[%c0_19, %c0_20, %c0_21], %24 {strides = array<i32>} : memref<4x8x1xf32, #tpu.memory_space<vmem>>, vector<4x8x1xf32>,
      %cst_22 = arith.constant 0.000000e+00 : f32
      %26 = vector.broadcast %cst_22 : f32 to vector<4x8x8xf32>
      %c0_23 = arith.constant 0 : index
      %c0_24 = arith.constant 0 : index
      %c0_25 = arith.constant 0 : index
      %27 = vector.load %arg15[%c0_23, %c0_24, %c0_25] : memref<4x8x8xf32, #tpu.memory_space<vmem>>, vector<4x8x8xf32>
      tpu.vector_store %arg15[%c0_23, %c0_24, %c0_25], %26 {strides = array<i32>} : memref<4x8x8xf32, #tpu.memory_space<vmem>>, vector<4x8x8xf32>,
    } else {
    }
    %c8_i32_2 = arith.constant 8 : i32
    %5 = arith.addi %0, %c8_i32_2 : i32
    %c1_i32 = arith.constant 1 : i32
    %6 = arith.subi %5, %c1_i32 : i32
    %7 = arith.cmpi sle, %1, %6 : i32
    %8 = arith.extui %7 : i1 to i32
    %c0_i32_3 = arith.constant 0 : i32
    %9 = arith.cmpi ne, %8, %c0_i32_3 : i32
    scf.if %9 {
      %c0 = arith.constant 0 : index
      %c0_6 = arith.constant 0 : index
      %c0_7 = arith.constant 0 : index
      %13 = vector.load %arg4[%c0, %c0_6, %c0_7] : memref<1x8x32xbf16, #tpu.memory_space<vmem>>, vector<1x8x32xbf16>
      %14 = vector.shape_cast %13 : vector<1x8x32xbf16> to vector<8x32xbf16>
      %c0_8 = arith.constant 0 : index
      %c0_9 = arith.constant 0 : index
      %15 = vector.load %arg7[%c0_8, %c0_9] : memref<32x64xbf16, #tpu.memory_space<vmem>>, vector<32x64xbf16>
      %cst = arith.constant dense<0.000000e+00> : vector<8x64xf32>
      %16 = tpu.matmul %14, %15, %cst {dimension_numbers = #tpu.dot_dimension_numbers<[1], [0], [0], [1], [0, 0, 1, 1], [], []>} : vector<8x32xbf16>, vector<32x64xbf16>, vector<8x64xf32> -> vector<8x64xf32>
      %c0_10 = arith.constant 0 : index
      %c0_11 = arith.constant 0 : index
      %17 = vector.load %arg8[%c0_10, %c0_11] : memref<1x64xf32, #tpu.memory_space<vmem>>, vector<1x64xf32>
      %18 = vector.broadcast %17 : vector<1x64xf32> to vector<8x64xf32>
      %19 = arith.addf %16, %18 : vector<8x64xf32>
      %20 = arith.truncf %19 : vector<8x64xf32> to vector<8x64xbf16>
      %21 = tpu.iota {dimensions = array<i32: 0>} : vector<8x8xi32>
      %22 = vector.broadcast %0 : i32 to vector<8x8xi32>
      %23 = arith.addi %22, %21 : vector<8x8xi32>
      %24 = tpu.iota {dimensions = array<i32: 1>} : vector<8x8xi32>
      %25 = vector.broadcast %1 : i32 to vector<8x8xi32>
      %26 = arith.addi %25, %24 : vector<8x8xi32>
      %27 = arith.cmpi sle, %26, %23 : vector<8x8xi32>
      %c0_12 = arith.constant 0 : index
      %c0_13 = arith.constant 0 : index
      %28 = vector.load %arg12[%c0_12, %c0_13] : memref<8x32xbf16, #tpu.memory_space<vmem>>, vector<8x8xbf16>
      %29 = vector.extract_strided_slice %20 {offsets = [0, 0], sizes = [8, 8], strides = [1, 1]} : vector<8x64xbf16> to vector<8x8xbf16>
      %30 = vector.extract_strided_slice %20 {offsets = [0, 32], sizes = [8, 8], strides = [1, 1]} : vector<8x64xbf16> to vector<8x8xbf16>
      %31 = tpu.transpose %29, [1, 0] : vector<8x8xbf16> -> vector<8x8xbf16>
      %cst_14 = arith.constant dense<0.000000e+00> : vector<8x8xf32>
      %32 = tpu.matmul %28, %31, %cst_14 {dimension_numbers = #tpu.dot_dimension_numbers<[1], [0], [0], [1], [0, 0, 1, 1], [], []>} : vector<8x8xbf16>, vector<8x8xbf16>, vector<8x8xf32> -> vector<8x8xf32>
      %cst_15 = arith.constant 0.353553385 : f32
      %33 = vector.broadcast %cst_15 : f32 to vector<8x8xf32>
      %34 = arith.mulf %32, %33 : vector<8x8xf32>
      %cst_16 = arith.constant 0xFF800000 : f32
      %35 = vector.broadcast %cst_16 : f32 to vector<8x8xf32>
      %36 = arith.select %27, %34, %35 : vector<8x8xi1>, vector<8x8xf32>
      %c0_17 = arith.constant 0 : index
      %c0_18 = arith.constant 0 : index
      %c0_19 = arith.constant 0 : index
      %37 = vector.load %arg13[%c0_17, %c0_18, %c0_19] : memref<4x8x1xf32, #tpu.memory_space<vmem>>, vector<1x8x1xf32>
      %38 = vector.shape_cast %37 : vector<1x8x1xf32> to vector<8x1xf32>
      %cst_20 = arith.constant dense<0xFF800000> : vector<8xf32>
      %39 = vector.multi_reduction <maximumf>, %36, %cst_20 [1] : vector<8x8xf32> to vector<8xf32>
      %40 = vector.shape_cast %39 : vector<8xf32> to vector<8x1xf32>
      %41 = arith.maximumf %38, %40 : vector<8x1xf32>
      %42 = arith.subf %38, %41 : vector<8x1xf32>
      %43 = math.exp %42 : vector<8x1xf32>
      %44 = vector.broadcast %41 : vector<8x1xf32> to vector<8x8xf32>
      %45 = arith.subf %36, %44 : vector<8x8xf32>
      %46 = math.exp %45 : vector<8x8xf32>
      %c0_21 = arith.constant 0 : index
      %c0_22 = arith.constant 0 : index
      %c0_23 = arith.constant 0 : index
      %47 = vector.load %arg14[%c0_21, %c0_22, %c0_23] : memref<4x8x1xf32, #tpu.memory_space<vmem>>, vector<1x8x1xf32>
      %48 = vector.shape_cast %47 : vector<1x8x1xf32> to vector<8x1xf32>
      %49 = arith.mulf %43, %48 : vector<8x1xf32>
      %cst_24 = arith.constant dense<0.000000e+00> : vector<8xf32>
      %50 = vector.multi_reduction <add>, %46, %cst_24 [1] : vector<8x8xf32> to vector<8xf32>
      %51 = vector.shape_cast %50 : vector<8xf32> to vector<8x1xf32>
      %52 = arith.addf %49, %51 : vector<8x1xf32>
      %c0_25 = arith.constant 0 : index
      %c0_26 = arith.constant 0 : index
      %c0_27 = arith.constant 0 : index
      %53 = vector.load %arg14[%c0_25, %c0_26, %c0_27] : memref<4x8x1xf32, #tpu.memory_space<vmem>>, vector<1x8x1xf32>
      %54 = vector.shape_cast %53 : vector<1x8x1xf32> to vector<8x1xf32>
      %55 = vector.shape_cast %52 : vector<8x1xf32> to vector<1x8x1xf32>
      tpu.vector_store %arg14[%c0_25, %c0_26, %c0_27], %55 {strides = array<i32>} : memref<4x8x1xf32, #tpu.memory_space<vmem>>, vector<1x8x1xf32>,
      %c0_28 = arith.constant 0 : index
      %c0_29 = arith.constant 0 : index
      %c0_30 = arith.constant 0 : index
      %56 = vector.load %arg15[%c0_28, %c0_29, %c0_30] : memref<4x8x8xf32, #tpu.memory_space<vmem>>, vector<1x8x8xf32>
      %57 = vector.shape_cast %56 : vector<1x8x8xf32> to vector<8x8xf32>
      %58 = vector.broadcast %43 : vector<8x1xf32> to vector<8x8xf32>
      %59 = arith.mulf %58, %57 : vector<8x8xf32>
      %60 = arith.truncf %46 : vector<8x8xf32> to vector<8x8xbf16>
      %cst_31 = arith.constant dense<0.000000e+00> : vector<8x8xf32>
      %61 = tpu.matmul %60, %30, %cst_31 {dimension_numbers = #tpu.dot_dimension_numbers<[1], [0], [0], [1], [0, 0, 1, 1], [], []>} : vector<8x8xbf16>, vector<8x8xbf16>, vector<8x8xf32> -> vector<8x8xf32>
      %62 = arith.addf %59, %61 : vector<8x8xf32>
      %c0_32 = arith.constant 0 : index
      %c0_33 = arith.constant 0 : index
      %c0_34 = arith.constant 0 : index
      %63 = vector.load %arg15[%c0_32, %c0_33, %c0_34] : memref<4x8x8xf32, #tpu.memory_space<vmem>>, vector<1x8x8xf32>
      %64 = vector.shape_cast %63 : vector<1x8x8xf32> to vector<8x8xf32>
      %65 = vector.shape_cast %62 : vector<8x8xf32> to vector<1x8x8xf32>
      tpu.vector_store %arg15[%c0_32, %c0_33, %c0_34], %65 {strides = array<i32>} : memref<4x8x8xf32, #tpu.memory_space<vmem>>, vector<1x8x8xf32>,
      %c0_35 = arith.constant 0 : index
      %c0_36 = arith.constant 0 : index
      %c0_37 = arith.constant 0 : index
      %66 = vector.load %arg13[%c0_35, %c0_36, %c0_37] : memref<4x8x1xf32, #tpu.memory_space<vmem>>, vector<1x8x1xf32>
      %67 = vector.shape_cast %66 : vector<1x8x1xf32> to vector<8x1xf32>
      %68 = vector.shape_cast %41 : vector<8x1xf32> to vector<1x8x1xf32>
      tpu.vector_store %arg13[%c0_35, %c0_36, %c0_37], %68 {strides = array<i32>} : memref<4x8x1xf32, #tpu.memory_space<vmem>>, vector<1x8x1xf32>,
      %c0_38 = arith.constant 0 : index
      %c8 = arith.constant 8 : index
      %69 = vector.load %arg12[%c0_38, %c8] : memref<8x32xbf16, #tpu.memory_space<vmem>>, vector<8x8xbf16>
      %70 = vector.extract_strided_slice %20 {offsets = [0, 8], sizes = [8, 8], strides = [1, 1]} : vector<8x64xbf16> to vector<8x8xbf16>
      %71 = vector.extract_strided_slice %20 {offsets = [0, 40], sizes = [8, 8], strides = [1, 1]} : vector<8x64xbf16> to vector<8x8xbf16>
      %72 = tpu.transpose %70, [1, 0] : vector<8x8xbf16> -> vector<8x8xbf16>
      %cst_39 = arith.constant dense<0.000000e+00> : vector<8x8xf32>
      %73 = tpu.matmul %69, %72, %cst_39 {dimension_numbers = #tpu.dot_dimension_numbers<[1], [0], [0], [1], [0, 0, 1, 1], [], []>} : vector<8x8xbf16>, vector<8x8xbf16>, vector<8x8xf32> -> vector<8x8xf32>
      %cst_40 = arith.constant 0.353553385 : f32
      %74 = vector.broadcast %cst_40 : f32 to vector<8x8xf32>
      %75 = arith.mulf %73, %74 : vector<8x8xf32>
      %cst_41 = arith.constant 0xFF800000 : f32
      %76 = vector.broadcast %cst_41 : f32 to vector<8x8xf32>
      %77 = arith.select %27, %75, %76 : vector<8x8xi1>, vector<8x8xf32>
      %c1 = arith.constant 1 : index
      %c0_42 = arith.constant 0 : index
      %c0_43 = arith.constant 0 : index
      %78 = vector.load %arg13[%c1, %c0_42, %c0_43] : memref<4x8x1xf32, #tpu.memory_space<vmem>>, vector<1x8x1xf32>
      %79 = vector.shape_cast %78 : vector<1x8x1xf32> to vector<8x1xf32>
      %cst_44 = arith.constant dense<0xFF800000> : vector<8xf32>
      %80 = vector.multi_reduction <maximumf>, %77, %cst_44 [1] : vector<8x8xf32> to vector<8xf32>
      %81 = vector.shape_cast %80 : vector<8xf32> to vector<8x1xf32>
      %82 = arith.maximumf %79, %81 : vector<8x1xf32>
      %83 = arith.subf %79, %82 : vector<8x1xf32>
      %84 = math.exp %83 : vector<8x1xf32>
      %85 = vector.broadcast %82 : vector<8x1xf32> to vector<8x8xf32>
      %86 = arith.subf %77, %85 : vector<8x8xf32>
      %87 = math.exp %86 : vector<8x8xf32>
      %c1_45 = arith.constant 1 : index
      %c0_46 = arith.constant 0 : index
      %c0_47 = arith.constant 0 : index
      %88 = vector.load %arg14[%c1_45, %c0_46, %c0_47] : memref<4x8x1xf32, #tpu.memory_space<vmem>>, vector<1x8x1xf32>
      %89 = vector.shape_cast %88 : vector<1x8x1xf32> to vector<8x1xf32>
      %90 = arith.mulf %84, %89 : vector<8x1xf32>
      %cst_48 = arith.constant dense<0.000000e+00> : vector<8xf32>
      %91 = vector.multi_reduction <add>, %87, %cst_48 [1] : vector<8x8xf32> to vector<8xf32>
      %92 = vector.shape_cast %91 : vector<8xf32> to vector<8x1xf32>
      %93 = arith.addf %90, %92 : vector<8x1xf32>
      %c1_49 = arith.constant 1 : index
      %c0_50 = arith.constant 0 : index
      %c0_51 = arith.constant 0 : index
      %94 = vector.load %arg14[%c1_49, %c0_50, %c0_51] : memref<4x8x1xf32, #tpu.memory_space<vmem>>, vector<1x8x1xf32>
      %95 = vector.shape_cast %94 : vector<1x8x1xf32> to vector<8x1xf32>
      %96 = vector.shape_cast %93 : vector<8x1xf32> to vector<1x8x1xf32>
      tpu.vector_store %arg14[%c1_49, %c0_50, %c0_51], %96 {strides = array<i32>} : memref<4x8x1xf32, #tpu.memory_space<vmem>>, vector<1x8x1xf32>,
      %c1_52 = arith.constant 1 : index
      %c0_53 = arith.constant 0 : index
      %c0_54 = arith.constant 0 : index
      %97 = vector.load %arg15[%c1_52, %c0_53, %c0_54] : memref<4x8x8xf32, #tpu.memory_space<vmem>>, vector<1x8x8xf32>
      %98 = vector.shape_cast %97 : vector<1x8x8xf32> to vector<8x8xf32>
      %99 = vector.broadcast %84 : vector<8x1xf32> to vector<8x8xf32>
      %100 = arith.mulf %99, %98 : vector<8x8xf32>
      %101 = arith.truncf %87 : vector<8x8xf32> to vector<8x8xbf16>
      %cst_55 = arith.constant dense<0.000000e+00> : vector<8x8xf32>
      %102 = tpu.matmul %101, %71, %cst_55 {dimension_numbers = #tpu.dot_dimension_numbers<[1], [0], [0], [1], [0, 0, 1, 1], [], []>} : vector<8x8xbf16>, vector<8x8xbf16>, vector<8x8xf32> -> vector<8x8xf32>
      %103 = arith.addf %100, %102 : vector<8x8xf32>
      %c1_56 = arith.constant 1 : index
      %c0_57 = arith.constant 0 : index
      %c0_58 = arith.constant 0 : index
      %104 = vector.load %arg15[%c1_56, %c0_57, %c0_58] : memref<4x8x8xf32, #tpu.memory_space<vmem>>, vector<1x8x8xf32>
      %105 = vector.shape_cast %104 : vector<1x8x8xf32> to vector<8x8xf32>
      %106 = vector.shape_cast %103 : vector<8x8xf32> to vector<1x8x8xf32>
      tpu.vector_store %arg15[%c1_56, %c0_57, %c0_58], %106 {strides = array<i32>} : memref<4x8x8xf32, #tpu.memory_space<vmem>>, vector<1x8x8xf32>,
      %c1_59 = arith.constant 1 : index
      %c0_60 = arith.constant 0 : index
      %c0_61 = arith.constant 0 : index
      %107 = vector.load %arg13[%c1_59, %c0_60, %c0_61] : memref<4x8x1xf32, #tpu.memory_space<vmem>>, vector<1x8x1xf32>
      %108 = vector.shape_cast %107 : vector<1x8x1xf32> to vector<8x1xf32>
      %109 = vector.shape_cast %82 : vector<8x1xf32> to vector<1x8x1xf32>
      tpu.vector_store %arg13[%c1_59, %c0_60, %c0_61], %109 {strides = array<i32>} : memref<4x8x1xf32, #tpu.memory_space<vmem>>, vector<1x8x1xf32>,
      %c0_62 = arith.constant 0 : index
      %c16 = arith.constant 16 : index
      %110 = vector.load %arg12[%c0_62, %c16] : memref<8x32xbf16, #tpu.memory_space<vmem>>, vector<8x8xbf16>
      %111 = vector.extract_strided_slice %20 {offsets = [0, 16], sizes = [8, 8], strides = [1, 1]} : vector<8x64xbf16> to vector<8x8xbf16>
      %112 = vector.extract_strided_slice %20 {offsets = [0, 48], sizes = [8, 8], strides = [1, 1]} : vector<8x64xbf16> to vector<8x8xbf16>
      %113 = tpu.transpose %111, [1, 0] : vector<8x8xbf16> -> vector<8x8xbf16>
      %cst_63 = arith.constant dense<0.000000e+00> : vector<8x8xf32>
      %114 = tpu.matmul %110, %113, %cst_63 {dimension_numbers = #tpu.dot_dimension_numbers<[1], [0], [0], [1], [0, 0, 1, 1], [], []>} : vector<8x8xbf16>, vector<8x8xbf16>, vector<8x8xf32> -> vector<8x8xf32>
      %cst_64 = arith.constant 0.353553385 : f32
      %115 = vector.broadcast %cst_64 : f32 to vector<8x8xf32>
      %116 = arith.mulf %114, %115 : vector<8x8xf32>
      %cst_65 = arith.constant 0xFF800000 : f32
      %117 = vector.broadcast %cst_65 : f32 to vector<8x8xf32>
      %118 = arith.select %27, %116, %117 : vector<8x8xi1>, vector<8x8xf32>
      %c2 = arith.constant 2 : index
      %c0_66 = arith.constant 0 : index
      %c0_67 = arith.constant 0 : index
      %119 = vector.load %arg13[%c2, %c0_66, %c0_67] : memref<4x8x1xf32, #tpu.memory_space<vmem>>, vector<1x8x1xf32>
      %120 = vector.shape_cast %119 : vector<1x8x1xf32> to vector<8x1xf32>
      %cst_68 = arith.constant dense<0xFF800000> : vector<8xf32>
      %121 = vector.multi_reduction <maximumf>, %118, %cst_68 [1] : vector<8x8xf32> to vector<8xf32>
      %122 = vector.shape_cast %121 : vector<8xf32> to vector<8x1xf32>
      %123 = arith.maximumf %120, %122 : vector<8x1xf32>
      %124 = arith.subf %120, %123 : vector<8x1xf32>
      %125 = math.exp %124 : vector<8x1xf32>
      %126 = vector.broadcast %123 : vector<8x1xf32> to vector<8x8xf32>
      %127 = arith.subf %118, %126 : vector<8x8xf32>
      %128 = math.exp %127 : vector<8x8xf32>
      %c2_69 = arith.constant 2 : index
      %c0_70 = arith.constant 0 : index
      %c0_71 = arith.constant 0 : index
      %129 = vector.load %arg14[%c2_69, %c0_70, %c0_71] : memref<4x8x1xf32, #tpu.memory_space<vmem>>, vector<1x8x1xf32>
      %130 = vector.shape_cast %129 : vector<1x8x1xf32> to vector<8x1xf32>
      %131 = arith.mulf %125, %130 : vector<8x1xf32>
      %cst_72 = arith.constant dense<0.000000e+00> : vector<8xf32>
      %132 = vector.multi_reduction <add>, %128, %cst_72 [1] : vector<8x8xf32> to vector<8xf32>
      %133 = vector.shape_cast %132 : vector<8xf32> to vector<8x1xf32>
      %134 = arith.addf %131, %133 : vector<8x1xf32>
      %c2_73 = arith.constant 2 : index
      %c0_74 = arith.constant 0 : index
      %c0_75 = arith.constant 0 : index
      %135 = vector.load %arg14[%c2_73, %c0_74, %c0_75] : memref<4x8x1xf32, #tpu.memory_space<vmem>>, vector<1x8x1xf32>
      %136 = vector.shape_cast %135 : vector<1x8x1xf32> to vector<8x1xf32>
      %137 = vector.shape_cast %134 : vector<8x1xf32> to vector<1x8x1xf32>
      tpu.vector_store %arg14[%c2_73, %c0_74, %c0_75], %137 {strides = array<i32>} : memref<4x8x1xf32, #tpu.memory_space<vmem>>, vector<1x8x1xf32>,
      %c2_76 = arith.constant 2 : index
      %c0_77 = arith.constant 0 : index
      %c0_78 = arith.constant 0 : index
      %138 = vector.load %arg15[%c2_76, %c0_77, %c0_78] : memref<4x8x8xf32, #tpu.memory_space<vmem>>, vector<1x8x8xf32>
      %139 = vector.shape_cast %138 : vector<1x8x8xf32> to vector<8x8xf32>
      %140 = vector.broadcast %125 : vector<8x1xf32> to vector<8x8xf32>
      %141 = arith.mulf %140, %139 : vector<8x8xf32>
      %142 = arith.truncf %128 : vector<8x8xf32> to vector<8x8xbf16>
      %cst_79 = arith.constant dense<0.000000e+00> : vector<8x8xf32>
      %143 = tpu.matmul %142, %112, %cst_79 {dimension_numbers = #tpu.dot_dimension_numbers<[1], [0], [0], [1], [0, 0, 1, 1], [], []>} : vector<8x8xbf16>, vector<8x8xbf16>, vector<8x8xf32> -> vector<8x8xf32>
      %144 = arith.addf %141, %143 : vector<8x8xf32>
      %c2_80 = arith.constant 2 : index
      %c0_81 = arith.constant 0 : index
      %c0_82 = arith.constant 0 : index
      %145 = vector.load %arg15[%c2_80, %c0_81, %c0_82] : memref<4x8x8xf32, #tpu.memory_space<vmem>>, vector<1x8x8xf32>
      %146 = vector.shape_cast %145 : vector<1x8x8xf32> to vector<8x8xf32>
      %147 = vector.shape_cast %144 : vector<8x8xf32> to vector<1x8x8xf32>
      tpu.vector_store %arg15[%c2_80, %c0_81, %c0_82], %147 {strides = array<i32>} : memref<4x8x8xf32, #tpu.memory_space<vmem>>, vector<1x8x8xf32>,
      %c2_83 = arith.constant 2 : index
      %c0_84 = arith.constant 0 : index
      %c0_85 = arith.constant 0 : index
      %148 = vector.load %arg13[%c2_83, %c0_84, %c0_85] : memref<4x8x1xf32, #tpu.memory_space<vmem>>, vector<1x8x1xf32>
      %149 = vector.shape_cast %148 : vector<1x8x1xf32> to vector<8x1xf32>
      %150 = vector.shape_cast %123 : vector<8x1xf32> to vector<1x8x1xf32>
      tpu.vector_store %arg13[%c2_83, %c0_84, %c0_85], %150 {strides = array<i32>} : memref<4x8x1xf32, #tpu.memory_space<vmem>>, vector<1x8x1xf32>,
      %c0_86 = arith.constant 0 : index
      %c24 = arith.constant 24 : index
      %151 = vector.load %arg12[%c0_86, %c24] : memref<8x32xbf16, #tpu.memory_space<vmem>>, vector<8x8xbf16>
      %152 = vector.extract_strided_slice %20 {offsets = [0, 24], sizes = [8, 8], strides = [1, 1]} : vector<8x64xbf16> to vector<8x8xbf16>
      %153 = vector.extract_strided_slice %20 {offsets = [0, 56], sizes = [8, 8], strides = [1, 1]} : vector<8x64xbf16> to vector<8x8xbf16>
      %154 = tpu.transpose %152, [1, 0] : vector<8x8xbf16> -> vector<8x8xbf16>
      %cst_87 = arith.constant dense<0.000000e+00> : vector<8x8xf32>
      %155 = tpu.matmul %151, %154, %cst_87 {dimension_numbers = #tpu.dot_dimension_numbers<[1], [0], [0], [1], [0, 0, 1, 1], [], []>} : vector<8x8xbf16>, vector<8x8xbf16>, vector<8x8xf32> -> vector<8x8xf32>
      %cst_88 = arith.constant 0.353553385 : f32
      %156 = vector.broadcast %cst_88 : f32 to vector<8x8xf32>
      %157 = arith.mulf %155, %156 : vector<8x8xf32>
      %cst_89 = arith.constant 0xFF800000 : f32
      %158 = vector.broadcast %cst_89 : f32 to vector<8x8xf32>
      %159 = arith.select %27, %157, %158 : vector<8x8xi1>, vector<8x8xf32>
      %c3 = arith.constant 3 : index
      %c0_90 = arith.constant 0 : index
      %c0_91 = arith.constant 0 : index
      %160 = vector.load %arg13[%c3, %c0_90, %c0_91] : memref<4x8x1xf32, #tpu.memory_space<vmem>>, vector<1x8x1xf32>
      %161 = vector.shape_cast %160 : vector<1x8x1xf32> to vector<8x1xf32>
      %cst_92 = arith.constant dense<0xFF800000> : vector<8xf32>
      %162 = vector.multi_reduction <maximumf>, %159, %cst_92 [1] : vector<8x8xf32> to vector<8xf32>
      %163 = vector.shape_cast %162 : vector<8xf32> to vector<8x1xf32>
      %164 = arith.maximumf %161, %163 : vector<8x1xf32>
      %165 = arith.subf %161, %164 : vector<8x1xf32>
      %166 = math.exp %165 : vector<8x1xf32>
      %167 = vector.broadcast %164 : vector<8x1xf32> to vector<8x8xf32>
      %168 = arith.subf %159, %167 : vector<8x8xf32>
      %169 = math.exp %168 : vector<8x8xf32>
      %c3_93 = arith.constant 3 : index
      %c0_94 = arith.constant 0 : index
      %c0_95 = arith.constant 0 : index
      %170 = vector.load %arg14[%c3_93, %c0_94, %c0_95] : memref<4x8x1xf32, #tpu.memory_space<vmem>>, vector<1x8x1xf32>
      %171 = vector.shape_cast %170 : vector<1x8x1xf32> to vector<8x1xf32>
      %172 = arith.mulf %166, %171 : vector<8x1xf32>
      %cst_96 = arith.constant dense<0.000000e+00> : vector<8xf32>
      %173 = vector.multi_reduction <add>, %169, %cst_96 [1] : vector<8x8xf32> to vector<8xf32>
      %174 = vector.shape_cast %173 : vector<8xf32> to vector<8x1xf32>
      %175 = arith.addf %172, %174 : vector<8x1xf32>
      %c3_97 = arith.constant 3 : index
      %c0_98 = arith.constant 0 : index
      %c0_99 = arith.constant 0 : index
      %176 = vector.load %arg14[%c3_97, %c0_98, %c0_99] : memref<4x8x1xf32, #tpu.memory_space<vmem>>, vector<1x8x1xf32>
      %177 = vector.shape_cast %176 : vector<1x8x1xf32> to vector<8x1xf32>
      %178 = vector.shape_cast %175 : vector<8x1xf32> to vector<1x8x1xf32>
      tpu.vector_store %arg14[%c3_97, %c0_98, %c0_99], %178 {strides = array<i32>} : memref<4x8x1xf32, #tpu.memory_space<vmem>>, vector<1x8x1xf32>,
      %c3_100 = arith.constant 3 : index
      %c0_101 = arith.constant 0 : index
      %c0_102 = arith.constant 0 : index
      %179 = vector.load %arg15[%c3_100, %c0_101, %c0_102] : memref<4x8x8xf32, #tpu.memory_space<vmem>>, vector<1x8x8xf32>
      %180 = vector.shape_cast %179 : vector<1x8x8xf32> to vector<8x8xf32>
      %181 = vector.broadcast %166 : vector<8x1xf32> to vector<8x8xf32>
      %182 = arith.mulf %181, %180 : vector<8x8xf32>
      %183 = arith.truncf %169 : vector<8x8xf32> to vector<8x8xbf16>
      %cst_103 = arith.constant dense<0.000000e+00> : vector<8x8xf32>
      %184 = tpu.matmul %183, %153, %cst_103 {dimension_numbers = #tpu.dot_dimension_numbers<[1], [0], [0], [1], [0, 0, 1, 1], [], []>} : vector<8x8xbf16>, vector<8x8xbf16>, vector<8x8xf32> -> vector<8x8xf32>
      %185 = arith.addf %182, %184 : vector<8x8xf32>
      %c3_104 = arith.constant 3 : index
      %c0_105 = arith.constant 0 : index
      %c0_106 = arith.constant 0 : index
      %186 = vector.load %arg15[%c3_104, %c0_105, %c0_106] : memref<4x8x8xf32, #tpu.memory_space<vmem>>, vector<1x8x8xf32>
      %187 = vector.shape_cast %186 : vector<1x8x8xf32> to vector<8x8xf32>
      %188 = vector.shape_cast %185 : vector<8x8xf32> to vector<1x8x8xf32>
      tpu.vector_store %arg15[%c3_104, %c0_105, %c0_106], %188 {strides = array<i32>} : memref<4x8x8xf32, #tpu.memory_space<vmem>>, vector<1x8x8xf32>,
      %c3_107 = arith.constant 3 : index
      %c0_108 = arith.constant 0 : index
      %c0_109 = arith.constant 0 : index
      %189 = vector.load %arg13[%c3_107, %c0_108, %c0_109] : memref<4x8x1xf32, #tpu.memory_space<vmem>>, vector<1x8x1xf32>
      %190 = vector.shape_cast %189 : vector<1x8x1xf32> to vector<8x1xf32>
      %191 = vector.shape_cast %164 : vector<8x1xf32> to vector<1x8x1xf32>
      tpu.vector_store %arg13[%c3_107, %c0_108, %c0_109], %191 {strides = array<i32>} : memref<4x8x1xf32, #tpu.memory_space<vmem>>, vector<1x8x1xf32>,
    } else {
    }
    %c0_i32_4 = arith.constant 0 : i32
    %10 = arith.cmpi eq, %arg2, %c0_i32_4 : i32
    %11 = arith.extui %10 : i1 to i32
    %c0_i32_5 = arith.constant 0 : i32
    %12 = arith.cmpi ne, %11, %c0_i32_5 : i32
    scf.if %12 {
      %cst = arith.constant 0.000000e+00 : f32
      %13 = vector.broadcast %cst : f32 to vector<8x32xf32>
      %c0 = arith.constant 0 : index
      %c0_6 = arith.constant 0 : index
      %c0_7 = arith.constant 0 : index
      %14 = vector.load %arg14[%c0, %c0_6, %c0_7] : memref<4x8x1xf32, #tpu.memory_space<vmem>>, vector<1x8x1xf32>
      %15 = vector.shape_cast %14 : vector<1x8x1xf32> to vector<8x1xf32>
      %16 = tpu.reciprocal %15 {approx = true} : vector<8x1xf32> -> vector<8x1xf32>
      %c0_8 = arith.constant 0 : index
      %c0_9 = arith.constant 0 : index
      %c0_10 = arith.constant 0 : index
      %17 = vector.load %arg15[%c0_8, %c0_9, %c0_10] : memref<4x8x8xf32, #tpu.memory_space<vmem>>, vector<1x8x8xf32>
      %18 = vector.shape_cast %17 : vector<1x8x8xf32> to vector<8x8xf32>
      %19 = vector.broadcast %16 : vector<8x1xf32> to vector<8x8xf32>
      %20 = arith.mulf %18, %19 : vector<8x8xf32>
      %21 = arith.truncf %20 : vector<8x8xf32> to vector<8x8xbf16>
      %c0_11 = arith.constant 0 : index
      %c0_12 = arith.constant 0 : index
      %c0_13 = arith.constant 0 : index
      %22 = vector.load %arg9[%c0_11, %c0_12, %c0_13] : memref<4x8x32xbf16, #tpu.memory_space<vmem>>, vector<1x8x32xbf16>
      %23 = vector.shape_cast %22 : vector<1x8x32xbf16> to vector<8x32xbf16>
      %cst_14 = arith.constant dense<0.000000e+00> : vector<8x32xf32>
      %24 = tpu.matmul %21, %23, %cst_14 {dimension_numbers = #tpu.dot_dimension_numbers<[1], [0], [0], [1], [0, 0, 1, 1], [], []>} : vector<8x8xbf16>, vector<8x32xbf16>, vector<8x32xf32> -> vector<8x32xf32>
      %25 = arith.addf %13, %24 : vector<8x32xf32>
      %c1 = arith.constant 1 : index
      %c0_15 = arith.constant 0 : index
      %c0_16 = arith.constant 0 : index
      %26 = vector.load %arg14[%c1, %c0_15, %c0_16] : memref<4x8x1xf32, #tpu.memory_space<vmem>>, vector<1x8x1xf32>
      %27 = vector.shape_cast %26 : vector<1x8x1xf32> to vector<8x1xf32>
      %28 = tpu.reciprocal %27 {approx = true} : vector<8x1xf32> -> vector<8x1xf32>
      %c1_17 = arith.constant 1 : index
      %c0_18 = arith.constant 0 : index
      %c0_19 = arith.constant 0 : index
      %29 = vector.load %arg15[%c1_17, %c0_18, %c0_19] : memref<4x8x8xf32, #tpu.memory_space<vmem>>, vector<1x8x8xf32>
      %30 = vector.shape_cast %29 : vector<1x8x8xf32> to vector<8x8xf32>
      %31 = vector.broadcast %28 : vector<8x1xf32> to vector<8x8xf32>
      %32 = arith.mulf %30, %31 : vector<8x8xf32>
      %33 = arith.truncf %32 : vector<8x8xf32> to vector<8x8xbf16>
      %c1_20 = arith.constant 1 : index
      %c0_21 = arith.constant 0 : index
      %c0_22 = arith.constant 0 : index
      %34 = vector.load %arg9[%c1_20, %c0_21, %c0_22] : memref<4x8x32xbf16, #tpu.memory_space<vmem>>, vector<1x8x32xbf16>
      %35 = vector.shape_cast %34 : vector<1x8x32xbf16> to vector<8x32xbf16>
      %cst_23 = arith.constant dense<0.000000e+00> : vector<8x32xf32>
      %36 = tpu.matmul %33, %35, %cst_23 {dimension_numbers = #tpu.dot_dimension_numbers<[1], [0], [0], [1], [0, 0, 1, 1], [], []>} : vector<8x8xbf16>, vector<8x32xbf16>, vector<8x32xf32> -> vector<8x32xf32>
      %37 = arith.addf %25, %36 : vector<8x32xf32>
      %c2 = arith.constant 2 : index
      %c0_24 = arith.constant 0 : index
      %c0_25 = arith.constant 0 : index
      %38 = vector.load %arg14[%c2, %c0_24, %c0_25] : memref<4x8x1xf32, #tpu.memory_space<vmem>>, vector<1x8x1xf32>
      %39 = vector.shape_cast %38 : vector<1x8x1xf32> to vector<8x1xf32>
      %40 = tpu.reciprocal %39 {approx = true} : vector<8x1xf32> -> vector<8x1xf32>
      %c2_26 = arith.constant 2 : index
      %c0_27 = arith.constant 0 : index
      %c0_28 = arith.constant 0 : index
      %41 = vector.load %arg15[%c2_26, %c0_27, %c0_28] : memref<4x8x8xf32, #tpu.memory_space<vmem>>, vector<1x8x8xf32>
      %42 = vector.shape_cast %41 : vector<1x8x8xf32> to vector<8x8xf32>
      %43 = vector.broadcast %40 : vector<8x1xf32> to vector<8x8xf32>
      %44 = arith.mulf %42, %43 : vector<8x8xf32>
      %45 = arith.truncf %44 : vector<8x8xf32> to vector<8x8xbf16>
      %c2_29 = arith.constant 2 : index
      %c0_30 = arith.constant 0 : index
      %c0_31 = arith.constant 0 : index
      %46 = vector.load %arg9[%c2_29, %c0_30, %c0_31] : memref<4x8x32xbf16, #tpu.memory_space<vmem>>, vector<1x8x32xbf16>
      %47 = vector.shape_cast %46 : vector<1x8x32xbf16> to vector<8x32xbf16>
      %cst_32 = arith.constant dense<0.000000e+00> : vector<8x32xf32>
      %48 = tpu.matmul %45, %47, %cst_32 {dimension_numbers = #tpu.dot_dimension_numbers<[1], [0], [0], [1], [0, 0, 1, 1], [], []>} : vector<8x8xbf16>, vector<8x32xbf16>, vector<8x32xf32> -> vector<8x32xf32>
      %49 = arith.addf %37, %48 : vector<8x32xf32>
      %c3 = arith.constant 3 : index
      %c0_33 = arith.constant 0 : index
      %c0_34 = arith.constant 0 : index
      %50 = vector.load %arg14[%c3, %c0_33, %c0_34] : memref<4x8x1xf32, #tpu.memory_space<vmem>>, vector<1x8x1xf32>
      %51 = vector.shape_cast %50 : vector<1x8x1xf32> to vector<8x1xf32>
      %52 = tpu.reciprocal %51 {approx = true} : vector<8x1xf32> -> vector<8x1xf32>
      %c3_35 = arith.constant 3 : index
      %c0_36 = arith.constant 0 : index
      %c0_37 = arith.constant 0 : index
      %53 = vector.load %arg15[%c3_35, %c0_36, %c0_37] : memref<4x8x8xf32, #tpu.memory_space<vmem>>, vector<1x8x8xf32>
      %54 = vector.shape_cast %53 : vector<1x8x8xf32> to vector<8x8xf32>
      %55 = vector.broadcast %52 : vector<8x1xf32> to vector<8x8xf32>
      %56 = arith.mulf %54, %55 : vector<8x8xf32>
      %57 = arith.truncf %56 : vector<8x8xf32> to vector<8x8xbf16>
      %c3_38 = arith.constant 3 : index
      %c0_39 = arith.constant 0 : index
      %c0_40 = arith.constant 0 : index
      %58 = vector.load %arg9[%c3_38, %c0_39, %c0_40] : memref<4x8x32xbf16, #tpu.memory_space<vmem>>, vector<1x8x32xbf16>
      %59 = vector.shape_cast %58 : vector<1x8x32xbf16> to vector<8x32xbf16>
      %cst_41 = arith.constant dense<0.000000e+00> : vector<8x32xf32>
      %60 = tpu.matmul %57, %59, %cst_41 {dimension_numbers = #tpu.dot_dimension_numbers<[1], [0], [0], [1], [0, 0, 1, 1], [], []>} : vector<8x8xbf16>, vector<8x32xbf16>, vector<8x32xf32> -> vector<8x32xf32>
      %61 = arith.addf %49, %60 : vector<8x32xf32>
      %c0_42 = arith.constant 0 : index
      %c0_43 = arith.constant 0 : index
      %62 = vector.load %arg10[%c0_42, %c0_43] : memref<1x32xf32, #tpu.memory_space<vmem>>, vector<1x32xf32>
      %63 = vector.broadcast %62 : vector<1x32xf32> to vector<8x32xf32>
      %64 = arith.addf %61, %63 : vector<8x32xf32>
      %c0_44 = arith.constant 0 : index
      %c0_45 = arith.constant 0 : index
      %c0_46 = arith.constant 0 : index
      %65 = vector.load %arg11[%c0_44, %c0_45, %c0_46] : memref<1x8x32xf32, #tpu.memory_space<vmem>>, vector<1x8x32xf32>
      %66 = vector.shape_cast %65 : vector<1x8x32xf32> to vector<8x32xf32>
      %67 = vector.shape_cast %64 : vector<8x32xf32> to vector<1x8x32xf32>
      tpu.vector_store %arg11[%c0_44, %c0_45, %c0_46], %67 {strides = array<i32>} : memref<1x8x32xf32, #tpu.memory_space<vmem>>, vector<1x8x32xf32>,
    } else {
    }
    return
  }
  func.func @transform_0(%arg0: i32, %arg1: i32, %arg2: i32) -> (i32, i32, i32) {
    %c0_i32 = arith.constant 0 : i32
    %c0_i32_0 = arith.constant 0 : i32
    return %arg0, %arg1, %c0_i32 : i32, i32, i32
  }
  func.func @transform_1(%arg0: i32, %arg1: i32, %arg2: i32) -> (i32, i32, i32) {
    %c0_i32 = arith.constant 0 : i32
    %c0_i32_0 = arith.constant 0 : i32
    return %arg0, %arg2, %c0_i32 : i32, i32, i32
  }
  func.func @transform_2(%arg0: i32, %arg1: i32, %arg2: i32) -> (i32, i32) {
    %c0_i32 = arith.constant 0 : i32
    %c0_i32_0 = arith.constant 0 : i32
    %c0_i32_1 = arith.constant 0 : i32
    return %c0_i32, %c0_i32_0 : i32, i32
  }
  func.func @transform_3(%arg0: i32, %arg1: i32, %arg2: i32) -> (i32, i32) {
    %c0_i32 = arith.constant 0 : i32
    %c0_i32_0 = arith.constant 0 : i32
    %c0_i32_1 = arith.constant 0 : i32
    return %c0_i32, %c0_i32_0 : i32, i32
  }
  func.func @transform_4(%arg0: i32, %arg1: i32, %arg2: i32) -> (i32, i32) {
    %c0_i32 = arith.constant 0 : i32
    %c0_i32_0 = arith.constant 0 : i32
    %c0_i32_1 = arith.constant 0 : i32
    return %c0_i32, %c0_i32_0 : i32, i32
  }
  func.func @transform_5(%arg0: i32, %arg1: i32, %arg2: i32) -> (i32, i32) {
    %c0_i32 = arith.constant 0 : i32
    %c0_i32_0 = arith.constant 0 : i32
    %c0_i32_1 = arith.constant 0 : i32
    return %c0_i32, %c0_i32_0 : i32, i32
  }
  func.func @transform_6(%arg0: i32, %arg1: i32, %arg2: i32) -> (i32, i32, i32) {
    %c0_i32 = arith.constant 0 : i32
    %c0_i32_0 = arith.constant 0 : i32
    %c0_i32_1 = arith.constant 0 : i32
    %c0_i32_2 = arith.constant 0 : i32
    return %c0_i32, %c0_i32_0, %c0_i32_1 : i32, i32, i32
  }
  func.func @transform_7(%arg0: i32, %arg1: i32, %arg2: i32) -> (i32, i32) {
    %c0_i32 = arith.constant 0 : i32
    %c0_i32_0 = arith.constant 0 : i32
    %c0_i32_1 = arith.constant 0 : i32
    return %c0_i32, %c0_i32_0 : i32, i32
  }
  func.func @transform_8(%arg0: i32, %arg1: i32, %arg2: i32) -> (i32, i32, i32) {
    %c0_i32 = arith.constant 0 : i32
    %c0_i32_0 = arith.constant 0 : i32
    return %arg0, %arg1, %c0_i32 : i32, i32, i32
  }
}

module attributes {stable_mosaic.version = 11 : i64} {
  func.func @kernel(%arg0: i32, %arg1: i32, %arg2: i32, %arg3: memref<1x8x32xbf16, #tpu.memory_space<vmem>>, %arg4: memref<1x8x32xbf16, #tpu.memory_space<vmem>>, %arg5: memref<32x32xbf16, #tpu.memory_space<vmem>>, %arg6: memref<1x32xf32, #tpu.memory_space<vmem>>, %arg7: memref<32x64xbf16, #tpu.memory_space<vmem>>, %arg8: memref<1x64xf32, #tpu.memory_space<vmem>>, %arg9: memref<4x8x32xbf16, #tpu.memory_space<vmem>>, %arg10: memref<1x32xf32, #tpu.memory_space<vmem>>, %arg11: memref<1x8x32xf32, #tpu.memory_space<vmem>>, %arg12: memref<8x32xbf16, #tpu.memory_space<vmem>>, %arg13: memref<4x8x1xf32, #tpu.memory_space<vmem>>, %arg14: memref<4x8x1xf32, #tpu.memory_space<vmem>>, %arg15: memref<4x8x8xf32, #tpu.memory_space<vmem>>) attributes {dimension_semantics = [#tpu.dimension_semantics<parallel>, #tpu.dimension_semantics<parallel>, #tpu.dimension_semantics<arbitrary>], iteration_bounds = array<i64: 2, 1, 1>, scalar_prefetch = 0 : i64, scratch_operands = 4 : i64, tpu.core_type = #tpu.core_type<tc>, window_params = [{transform_indices = @transform_0, window_bounds = array<i64: 1, 8, 32>}, {transform_indices = @transform_1, window_bounds = array<i64: 1, 8, 32>}, {pipeline_mode = #tpu.pipeline_mode<synchronous>, transform_indices = @transform_2, window_bounds = array<i64: 32, 32>}, {pipeline_mode = #tpu.pipeline_mode<synchronous>, transform_indices = @transform_3, window_bounds = array<i64: 1, 32>}, {pipeline_mode = #tpu.pipeline_mode<synchronous>, transform_indices = @transform_4, window_bounds = array<i64: 32, 64>}, {pipeline_mode = #tpu.pipeline_mode<synchronous>, transform_indices = @transform_5, window_bounds = array<i64: 1, 64>}, {pipeline_mode = #tpu.pipeline_mode<synchronous>, transform_indices = @transform_6, window_bounds = array<i64: 4, 8, 32>}, {pipeline_mode = #tpu.pipeline_mode<synchronous>, transform_indices = @transform_7, window_bounds = array<i64: 1, 32>}, {transform_indices = @transform_8, window_bounds = array<i64: 1, 8, 32>}]} {
    %c8_i32 = arith.constant 8 : i32
    %0 = arith.muli %arg1, %c8_i32 : i32
    %c8_i32_0 = arith.constant 8 : i32
    %1 = arith.muli %arg2, %c8_i32_0 : i32
    %c0_i32 = arith.constant 0 : i32
    %2 = arith.cmpi eq, %arg2, %c0_i32 : i32
    %3 = arith.extui %2 : i1 to i32
    %c0_i32_1 = arith.constant 0 : i32
    %4 = arith.cmpi ne, %3, %c0_i32_1 : i32
    scf.if %4 {
      %c0 = arith.constant 0 : index
      %c0_6 = arith.constant 0 : index
      %c0_7 = arith.constant 0 : index
      %13 = vector.load %arg3[%c0, %c0_6, %c0_7] : memref<1x8x32xbf16, #tpu.memory_space<vmem>>, vector<1x8x32xbf16>
      %14 = vector.shape_cast %13 : vector<1x8x32xbf16> to vector<8x32xbf16>
      %c0_8 = arith.constant 0 : index
      %c0_9 = arith.constant 0 : index
      %15 = vector.load %arg5[%c0_8, %c0_9] : memref<32x32xbf16, #tpu.memory_space<vmem>>, vector<32x32xbf16>
      %cst = arith.constant dense<0.000000e+00> : vector<8x32xf32>
      %16 = tpu.matmul %14, %15, %cst {dimension_numbers = #tpu.dot_dimension_numbers<[1], [0], [0], [1], [0, 0, 1, 1], [], []>} : vector<8x32xbf16>, vector<32x32xbf16>, vector<8x32xf32> -> vector<8x32xf32>
      %c0_10 = arith.constant 0 : index
      %c0_11 = arith.constant 0 : index
      %17 = vector.load %arg6[%c0_10, %c0_11] : memref<1x32xf32, #tpu.memory_space<vmem>>, vector<1x32xf32>
      %18 = vector.broadcast %17 : vector<1x32xf32> to vector<8x32xf32>
      %19 = arith.addf %16, %18 : vector<8x32xf32>
      %20 = arith.truncf %19 : vector<8x32xf32> to vector<8x32xbf16>
      %c0_12 = arith.constant 0 : index
      %c0_13 = arith.constant 0 : index
      %21 = vector.load %arg12[%c0_12, %c0_13] : memref<8x32xbf16, #tpu.memory_space<vmem>>, vector<8x32xbf16>
      tpu.vector_store %arg12[%c0_12, %c0_13], %20 {strides = array<i32>} : memref<8x32xbf16, #tpu.memory_space<vmem>>, vector<8x32xbf16>,
      %cst_14 = arith.constant 0xFF800000 : f32
      %22 = vector.broadcast %cst_14 : f32 to vector<4x8x1xf32>
      %c0_15 = arith.constant 0 : index
      %c0_16 = arith.constant 0 : index
      %c0_17 = arith.constant 0 : index
      %23 = vector.load %arg13[%c0_15, %c0_16, %c0_17] : memref<4x8x1xf32, #tpu.memory_space<vmem>>, vector<4x8x1xf32>
      tpu.vector_store %arg13[%c0_15, %c0_16, %c0_17], %22 {strides = array<i32>} : memref<4x8x1xf32, #tpu.memory_space<vmem>>, vector<4x8x1xf32>,
      %cst_18 = arith.constant 0.000000e+00 : f32
      %24 = vector.broadcast %cst_18 : f32 to vector<4x8x1xf32>
      %c0_19 = arith.constant 0 : index
      %c0_20 = arith.constant 0 : index
      %c0_21 = arith.constant 0 : index
      %25 = vector.load %arg14[%c0_19, %c0_20, %c0_21] : memref<4x8x1xf32, #tpu.memory_space<vmem>>, vector<4x8x1xf32>
      tpu.vector_store %arg14[%c0_19, %c0_20, %c0_21], %24 {strides = array<i32>} : memref<4x8x1xf32, #tpu.memory_space<vmem>>, vector<4x8x1xf32>,
      %cst_22 = arith.constant 0.000000e+00 : f32
      %26 = vector.broadcast %cst_22 : f32 to vector<4x8x8xf32>
      %c0_23 = arith.constant 0 : index
      %c0_24 = arith.constant 0 : index
      %c0_25 = arith.constant 0 : index
      %27 = vector.load %arg15[%c0_23, %c0_24, %c0_25] : memref<4x8x8xf32, #tpu.memory_space<vmem>>, vector<4x8x8xf32>
      tpu.vector_store %arg15[%c0_23, %c0_24, %c0_25], %26 {strides = array<i32>} : memref<4x8x8xf32, #tpu.memory_space<vmem>>, vector<4x8x8xf32>,
    } else {
    }
    %c8_i32_2 = arith.constant 8 : i32
    %5 = arith.addi %0, %c8_i32_2 : i32
    %c1_i32 = arith.constant 1 : i32
    %6 = arith.subi %5, %c1_i32 : i32
    %7 = arith.cmpi sle, %1, %6 : i32
    %8 = arith.extui %7 : i1 to i32
    %c0_i32_3 = arith.constant 0 : i32
    %9 = arith.cmpi ne, %8, %c0_i32_3 : i32
    scf.if %9 {
      %c0 = arith.constant 0 : index
      %c0_6 = arith.constant 0 : index
      %c0_7 = arith.constant 0 : index
      %13 = vector.load %arg4[%c0, %c0_6, %c0_7] : memref<1x8x32xbf16, #tpu.memory_space<vmem>>, vector<1x8x32xbf16>
      %14 = vector.shape_cast %13 : vector<1x8x32xbf16> to vector<8x32xbf16>
      %c0_8 = arith.constant 0 : index
      %c0_9 = arith.constant 0 : index
      %15 = vector.load %arg7[%c0_8, %c0_9] : memref<32x64xbf16, #tpu.memory_space<vmem>>, vector<32x64xbf16>
      %cst = arith.constant dense<0.000000e+00> : vector<8x64xf32>
      %16 = tpu.matmul %14, %15, %cst {dimension_numbers = #tpu.dot_dimension_numbers<[1], [0], [0], [1], [0, 0, 1, 1], [], []>} : vector<8x32xbf16>, vector<32x64xbf16>, vector<8x64xf32> -> vector<8x64xf32>
      %c0_10 = arith.constant 0 : index
      %c0_11 = arith.constant 0 : index
      %17 = vector.load %arg8[%c0_10, %c0_11] : memref<1x64xf32, #tpu.memory_space<vmem>>, vector<1x64xf32>
      %18 = vector.broadcast %17 : vector<1x64xf32> to vector<8x64xf32>
      %19 = arith.addf %16, %18 : vector<8x64xf32>
      %20 = arith.truncf %19 : vector<8x64xf32> to vector<8x64xbf16>
      %21 = tpu.iota {dimensions = array<i32: 0>} : vector<8x8xi32>
      %22 = vector.broadcast %0 : i32 to vector<8x8xi32>
      %23 = arith.addi %22, %21 : vector<8x8xi32>
      %24 = tpu.iota {dimensions = array<i32: 1>} : vector<8x8xi32>
      %25 = vector.broadcast %1 : i32 to vector<8x8xi32>
      %26 = arith.addi %25, %24 : vector<8x8xi32>
      %27 = arith.cmpi sle, %26, %23 : vector<8x8xi32>
      %c0_12 = arith.constant 0 : index
      %c0_13 = arith.constant 0 : index
      %28 = vector.load %arg12[%c0_12, %c0_13] : memref<8x32xbf16, #tpu.memory_space<vmem>>, vector<8x8xbf16>
      %29 = vector.extract_strided_slice %20 {offsets = [0, 0], sizes = [8, 8], strides = [1, 1]} : vector<8x64xbf16> to vector<8x8xbf16>
      %30 = vector.extract_strided_slice %20 {offsets = [0, 32], sizes = [8, 8], strides = [1, 1]} : vector<8x64xbf16> to vector<8x8xbf16>
      %31 = tpu.transpose %29, [1, 0] : vector<8x8xbf16> -> vector<8x8xbf16>
      %cst_14 = arith.constant dense<0.000000e+00> : vector<8x8xf32>
      %32 = tpu.matmul %28, %31, %cst_14 {dimension_numbers = #tpu.dot_dimension_numbers<[1], [0], [0], [1], [0, 0, 1, 1], [], []>} : vector<8x8xbf16>, vector<8x8xbf16>, vector<8x8xf32> -> vector<8x8xf32>
      %cst_15 = arith.constant 0.353553385 : f32
      %33 = vector.broadcast %cst_15 : f32 to vector<8x8xf32>
      %34 = arith.mulf %32, %33 : vector<8x8xf32>
      %cst_16 = arith.constant 0xFF800000 : f32
      %35 = vector.broadcast %cst_16 : f32 to vector<8x8xf32>
      %36 = arith.select %27, %34, %35 : vector<8x8xi1>, vector<8x8xf32>
      %c0_17 = arith.constant 0 : index
      %c0_18 = arith.constant 0 : index
      %c0_19 = arith.constant 0 : index
      %37 = vector.load %arg13[%c0_17, %c0_18, %c0_19] : memref<4x8x1xf32, #tpu.memory_space<vmem>>, vector<1x8x1xf32>
      %38 = vector.shape_cast %37 : vector<1x8x1xf32> to vector<8x1xf32>
      %cst_20 = arith.constant dense<0xFF800000> : vector<8xf32>
      %39 = vector.multi_reduction <maximumf>, %36, %cst_20 [1] : vector<8x8xf32> to vector<8xf32>
      %40 = vector.shape_cast %39 : vector<8xf32> to vector<8x1xf32>
      %41 = arith.maximumf %38, %40 : vector<8x1xf32>
      %42 = arith.subf %38, %41 : vector<8x1xf32>
      %43 = math.exp %42 : vector<8x1xf32>
      %44 = vector.broadcast %41 : vector<8x1xf32> to vector<8x8xf32>
      %45 = arith.subf %36, %44 : vector<8x8xf32>
      %46 = math.exp %45 : vector<8x8xf32>
      %c0_21 = arith.constant 0 : index
      %c0_22 = arith.constant 0 : index
      %c0_23 = arith.constant 0 : index
      %47 = vector.load %arg14[%c0_21, %c0_22, %c0_23] : memref<4x8x1xf32, #tpu.memory_space<vmem>>, vector<1x8x1xf32>
      %48 = vector.shape_cast %47 : vector<1x8x1xf32> to vector<8x1xf32>
      %49 = arith.mulf %43, %48 : vector<8x1xf32>
      %cst_24 = arith.constant dense<0.000000e+00> : vector<8xf32>
      %50 = vector.multi_reduction <add>, %46, %cst_24 [1] : vector<8x8xf32> to vector<8xf32>
      %51 = vector.shape_cast %50 : vector<8xf32> to vector<8x1xf32>
      %52 = arith.addf %49, %51 : vector<8x1xf32>
      %c0_25 = arith.constant 0 : index
      %c0_26 = arith.constant 0 : index
      %c0_27 = arith.constant 0 : index
      %53 = vector.load %arg14[%c0_25, %c0_26, %c0_27] : memref<4x8x1xf32, #tpu.memory_space<vmem>>, vector<1x8x1xf32>
      %54 = vector.shape_cast %53 : vector<1x8x1xf32> to vector<8x1xf32>
      %55 = vector.shape_cast %52 : vector<8x1xf32> to vector<1x8x1xf32>
      tpu.vector_store %arg14[%c0_25, %c0_26, %c0_27], %55 {strides = array<i32>} : memref<4x8x1xf32, #tpu.memory_space<vmem>>, vector<1x8x1xf32>,
      %c0_28 = arith.constant 0 : index
      %c0_29 = arith.constant 0 : index
      %c0_30 = arith.constant 0 : index
      %56 = vector.load %arg15[%c0_28, %c0_29, %c0_30] : memref<4x8x8xf32, #tpu.memory_space<vmem>>, vector<1x8x8xf32>
      %57 = vector.shape_cast %56 : vector<1x8x8xf32> to vector<8x8xf32>
      %58 = vector.broadcast %43 : vector<8x1xf32> to vector<8x8xf32>
      %59 = arith.mulf %58, %57 : vector<8x8xf32>
      %60 = arith.truncf %46 : vector<8x8xf32> to vector<8x8xbf16>
      %cst_31 = arith.constant dense<0.000000e+00> : vector<8x8xf32>
      %61 = tpu.matmul %60, %30, %cst_31 {dimension_numbers = #tpu.dot_dimension_numbers<[1], [0], [0], [1], [0, 0, 1, 1], [], []>} : vector<8x8xbf16>, vector<8x8xbf16>, vector<8x8xf32> -> vector<8x8xf32>
      %62 = arith.addf %59, %61 : vector<8x8xf32>
      %c0_32 = arith.constant 0 : index
      %c0_33 = arith.constant 0 : index
      %c0_34 = arith.constant 0 : index
      %63 = vector.load %arg15[%c0_32, %c0_33, %c0_34] : memref<4x8x8xf32, #tpu.memory_space<vmem>>, vector<1x8x8xf32>
      %64 = vector.shape_cast %63 : vector<1x8x8xf32> to vector<8x8xf32>
      %65 = vector.shape_cast %62 : vector<8x8xf32> to vector<1x8x8xf32>
      tpu.vector_store %arg15[%c0_32, %c0_33, %c0_34], %65 {strides = array<i32>} : memref<4x8x8xf32, #tpu.memory_space<vmem>>, vector<1x8x8xf32>,
      %c0_35 = arith.constant 0 : index
      %c0_36 = arith.constant 0 : index
      %c0_37 = arith.constant 0 : index
      %66 = vector.load %arg13[%c0_35, %c0_36, %c0_37] : memref<4x8x1xf32, #tpu.memory_space<vmem>>, vector<1x8x1xf32>
      %67 = vector.shape_cast %66 : vector<1x8x1xf32> to vector<8x1xf32>
      %68 = vector.shape_cast %41 : vector<8x1xf32> to vector<1x8x1xf32>
      tpu.vector_store %arg13[%c0_35, %c0_36, %c0_37], %68 {strides = array<i32>} : memref<4x8x1xf32, #tpu.memory_space<vmem>>, vector<1x8x1xf32>,
      %c0_38 = arith.constant 0 : index
      %c8 = arith.constant 8 : index
      %69 = vector.load %arg12[%c0_38, %c8] : memref<8x32xbf16, #tpu.memory_space<vmem>>, vector<8x8xbf16>
      %70 = vector.extract_strided_slice %20 {offsets = [0, 8], sizes = [8, 8], strides = [1, 1]} : vector<8x64xbf16> to vector<8x8xbf16>
      %71 = vector.extract_strided_slice %20 {offsets = [0, 40], sizes = [8, 8], strides = [1, 1]} : vector<8x64xbf16> to vector<8x8xbf16>
      %72 = tpu.transpose %70, [1, 0] : vector<8x8xbf16> -> vector<8x8xbf16>
      %cst_39 = arith.constant dense<0.000000e+00> : vector<8x8xf32>
      %73 = tpu.matmul %69, %72, %cst_39 {dimension_numbers = #tpu.dot_dimension_numbers<[1], [0], [0], [1], [0, 0, 1, 1], [], []>} : vector<8x8xbf16>, vector<8x8xbf16>, vector<8x8xf32> -> vector<8x8xf32>
      %cst_40 = arith.constant 0.353553385 : f32
      %74 = vector.broadcast %cst_40 : f32 to vector<8x8xf32>
      %75 = arith.mulf %73, %74 : vector<8x8xf32>
      %cst_41 = arith.constant 0xFF800000 : f32
      %76 = vector.broadcast %cst_41 : f32 to vector<8x8xf32>
      %77 = arith.select %27, %75, %76 : vector<8x8xi1>, vector<8x8xf32>
      %c1 = arith.constant 1 : index
      %c0_42 = arith.constant 0 : index
      %c0_43 = arith.constant 0 : index
      %78 = vector.load %arg13[%c1, %c0_42, %c0_43] : memref<4x8x1xf32, #tpu.memory_space<vmem>>, vector<1x8x1xf32>
      %79 = vector.shape_cast %78 : vector<1x8x1xf32> to vector<8x1xf32>
      %cst_44 = arith.constant dense<0xFF800000> : vector<8xf32>
      %80 = vector.multi_reduction <maximumf>, %77, %cst_44 [1] : vector<8x8xf32> to vector<8xf32>
      %81 = vector.shape_cast %80 : vector<8xf32> to vector<8x1xf32>
      %82 = arith.maximumf %79, %81 : vector<8x1xf32>
      %83 = arith.subf %79, %82 : vector<8x1xf32>
      %84 = math.exp %83 : vector<8x1xf32>
      %85 = vector.broadcast %82 : vector<8x1xf32> to vector<8x8xf32>
      %86 = arith.subf %77, %85 : vector<8x8xf32>
      %87 = math.exp %86 : vector<8x8xf32>
      %c1_45 = arith.constant 1 : index
      %c0_46 = arith.constant 0 : index
      %c0_47 = arith.constant 0 : index
      %88 = vector.load %arg14[%c1_45, %c0_46, %c0_47] : memref<4x8x1xf32, #tpu.memory_space<vmem>>, vector<1x8x1xf32>
      %89 = vector.shape_cast %88 : vector<1x8x1xf32> to vector<8x1xf32>
      %90 = arith.mulf %84, %89 : vector<8x1xf32>
      %cst_48 = arith.constant dense<0.000000e+00> : vector<8xf32>
      %91 = vector.multi_reduction <add>, %87, %cst_48 [1] : vector<8x8xf32> to vector<8xf32>
      %92 = vector.shape_cast %91 : vector<8xf32> to vector<8x1xf32>
      %93 = arith.addf %90, %92 : vector<8x1xf32>
      %c1_49 = arith.constant 1 : index
      %c0_50 = arith.constant 0 : index
      %c0_51 = arith.constant 0 : index
      %94 = vector.load %arg14[%c1_49, %c0_50, %c0_51] : memref<4x8x1xf32, #tpu.memory_space<vmem>>, vector<1x8x1xf32>
      %95 = vector.shape_cast %94 : vector<1x8x1xf32> to vector<8x1xf32>
      %96 = vector.shape_cast %93 : vector<8x1xf32> to vector<1x8x1xf32>
      tpu.vector_store %arg14[%c1_49, %c0_50, %c0_51], %96 {strides = array<i32>} : memref<4x8x1xf32, #tpu.memory_space<vmem>>, vector<1x8x1xf32>,
      %c1_52 = arith.constant 1 : index
      %c0_53 = arith.constant 0 : index
      %c0_54 = arith.constant 0 : index
      %97 = vector.load %arg15[%c1_52, %c0_53, %c0_54] : memref<4x8x8xf32, #tpu.memory_space<vmem>>, vector<1x8x8xf32>
      %98 = vector.shape_cast %97 : vector<1x8x8xf32> to vector<8x8xf32>
      %99 = vector.broadcast %84 : vector<8x1xf32> to vector<8x8xf32>
      %100 = arith.mulf %99, %98 : vector<8x8xf32>
      %101 = arith.truncf %87 : vector<8x8xf32> to vector<8x8xbf16>
      %cst_55 = arith.constant dense<0.000000e+00> : vector<8x8xf32>
      %102 = tpu.matmul %101, %71, %cst_55 {dimension_numbers = #tpu.dot_dimension_numbers<[1], [0], [0], [1], [0, 0, 1, 1], [], []>} : vector<8x8xbf16>, vector<8x8xbf16>, vector<8x8xf32> -> vector<8x8xf32>
      %103 = arith.addf %100, %102 : vector<8x8xf32>
      %c1_56 = arith.constant 1 : index
      %c0_57 = arith.constant 0 : index
      %c0_58 = arith.constant 0 : index
      %104 = vector.load %arg15[%c1_56, %c0_57, %c0_58] : memref<4x8x8xf32, #tpu.memory_space<vmem>>, vector<1x8x8xf32>
      %105 = vector.shape_cast %104 : vector<1x8x8xf32> to vector<8x8xf32>
      %106 = vector.shape_cast %103 : vector<8x8xf32> to vector<1x8x8xf32>
      tpu.vector_store %arg15[%c1_56, %c0_57, %c0_58], %106 {strides = array<i32>} : memref<4x8x8xf32, #tpu.memory_space<vmem>>, vector<1x8x8xf32>,
      %c1_59 = arith.constant 1 : index
      %c0_60 = arith.constant 0 : index
      %c0_61 = arith.constant 0 : index
      %107 = vector.load %arg13[%c1_59, %c0_60, %c0_61] : memref<4x8x1xf32, #tpu.memory_space<vmem>>, vector<1x8x1xf32>
      %108 = vector.shape_cast %107 : vector<1x8x1xf32> to vector<8x1xf32>
      %109 = vector.shape_cast %82 : vector<8x1xf32> to vector<1x8x1xf32>
      tpu.vector_store %arg13[%c1_59, %c0_60, %c0_61], %109 {strides = array<i32>} : memref<4x8x1xf32, #tpu.memory_space<vmem>>, vector<1x8x1xf32>,
      %c0_62 = arith.constant 0 : index
      %c16 = arith.constant 16 : index
      %110 = vector.load %arg12[%c0_62, %c16] : memref<8x32xbf16, #tpu.memory_space<vmem>>, vector<8x8xbf16>
      %111 = vector.extract_strided_slice %20 {offsets = [0, 16], sizes = [8, 8], strides = [1, 1]} : vector<8x64xbf16> to vector<8x8xbf16>
      %112 = vector.extract_strided_slice %20 {offsets = [0, 48], sizes = [8, 8], strides = [1, 1]} : vector<8x64xbf16> to vector<8x8xbf16>
      %113 = tpu.transpose %111, [1, 0] : vector<8x8xbf16> -> vector<8x8xbf16>
      %cst_63 = arith.constant dense<0.000000e+00> : vector<8x8xf32>
      %114 = tpu.matmul %110, %113, %cst_63 {dimension_numbers = #tpu.dot_dimension_numbers<[1], [0], [0], [1], [0, 0, 1, 1], [], []>} : vector<8x8xbf16>, vector<8x8xbf16>, vector<8x8xf32> -> vector<8x8xf32>
      %cst_64 = arith.constant 0.353553385 : f32
      %115 = vector.broadcast %cst_64 : f32 to vector<8x8xf32>
      %116 = arith.mulf %114, %115 : vector<8x8xf32>
      %cst_65 = arith.constant 0xFF800000 : f32
      %117 = vector.broadcast %cst_65 : f32 to vector<8x8xf32>
      %118 = arith.select %27, %116, %117 : vector<8x8xi1>, vector<8x8xf32>
      %c2 = arith.constant 2 : index
      %c0_66 = arith.constant 0 : index
      %c0_67 = arith.constant 0 : index
      %119 = vector.load %arg13[%c2, %c0_66, %c0_67] : memref<4x8x1xf32, #tpu.memory_space<vmem>>, vector<1x8x1xf32>
      %120 = vector.shape_cast %119 : vector<1x8x1xf32> to vector<8x1xf32>
      %cst_68 = arith.constant dense<0xFF800000> : vector<8xf32>
      %121 = vector.multi_reduction <maximumf>, %118, %cst_68 [1] : vector<8x8xf32> to vector<8xf32>
      %122 = vector.shape_cast %121 : vector<8xf32> to vector<8x1xf32>
      %123 = arith.maximumf %120, %122 : vector<8x1xf32>
      %124 = arith.subf %120, %123 : vector<8x1xf32>
      %125 = math.exp %124 : vector<8x1xf32>
      %126 = vector.broadcast %123 : vector<8x1xf32> to vector<8x8xf32>
      %127 = arith.subf %118, %126 : vector<8x8xf32>
      %128 = math.exp %127 : vector<8x8xf32>
      %c2_69 = arith.constant 2 : index
      %c0_70 = arith.constant 0 : index
      %c0_71 = arith.constant 0 : index
      %129 = vector.load %arg14[%c2_69, %c0_70, %c0_71] : memref<4x8x1xf32, #tpu.memory_space<vmem>>, vector<1x8x1xf32>
      %130 = vector.shape_cast %129 : vector<1x8x1xf32> to vector<8x1xf32>
      %131 = arith.mulf %125, %130 : vector<8x1xf32>
      %cst_72 = arith.constant dense<0.000000e+00> : vector<8xf32>
      %132 = vector.multi_reduction <add>, %128, %cst_72 [1] : vector<8x8xf32> to vector<8xf32>
      %133 = vector.shape_cast %132 : vector<8xf32> to vector<8x1xf32>
      %134 = arith.addf %131, %133 : vector<8x1xf32>
      %c2_73 = arith.constant 2 : index
      %c0_74 = arith.constant 0 : index
      %c0_75 = arith.constant 0 : index
      %135 = vector.load %arg14[%c2_73, %c0_74, %c0_75] : memref<4x8x1xf32, #tpu.memory_space<vmem>>, vector<1x8x1xf32>
      %136 = vector.shape_cast %135 : vector<1x8x1xf32> to vector<8x1xf32>
      %137 = vector.shape_cast %134 : vector<8x1xf32> to vector<1x8x1xf32>
      tpu.vector_store %arg14[%c2_73, %c0_74, %c0_75], %137 {strides = array<i32>} : memref<4x8x1xf32, #tpu.memory_space<vmem>>, vector<1x8x1xf32>,
      %c2_76 = arith.constant 2 : index
      %c0_77 = arith.constant 0 : index
      %c0_78 = arith.constant 0 : index
      %138 = vector.load %arg15[%c2_76, %c0_77, %c0_78] : memref<4x8x8xf32, #tpu.memory_space<vmem>>, vector<1x8x8xf32>
      %139 = vector.shape_cast %138 : vector<1x8x8xf32> to vector<8x8xf32>
      %140 = vector.broadcast %125 : vector<8x1xf32> to vector<8x8xf32>
      %141 = arith.mulf %140, %139 : vector<8x8xf32>
      %142 = arith.truncf %128 : vector<8x8xf32> to vector<8x8xbf16>
      %cst_79 = arith.constant dense<0.000000e+00> : vector<8x8xf32>
      %143 = tpu.matmul %142, %112, %cst_79 {dimension_numbers = #tpu.dot_dimension_numbers<[1], [0], [0], [1], [0, 0, 1, 1], [], []>} : vector<8x8xbf16>, vector<8x8xbf16>, vector<8x8xf32> -> vector<8x8xf32>
      %144 = arith.addf %141, %143 : vector<8x8xf32>
      %c2_80 = arith.constant 2 : index
      %c0_81 = arith.constant 0 : index
      %c0_82 = arith.constant 0 : index
      %145 = vector.load %arg15[%c2_80, %c0_81, %c0_82] : memref<4x8x8xf32, #tpu.memory_space<vmem>>, vector<1x8x8xf32>
      %146 = vector.shape_cast %145 : vector<1x8x8xf32> to vector<8x8xf32>
      %147 = vector.shape_cast %144 : vector<8x8xf32> to vector<1x8x8xf32>
      tpu.vector_store %arg15[%c2_80, %c0_81, %c0_82], %147 {strides = array<i32>} : memref<4x8x8xf32, #tpu.memory_space<vmem>>, vector<1x8x8xf32>,
      %c2_83 = arith.constant 2 : index
      %c0_84 = arith.constant 0 : index
      %c0_85 = arith.constant 0 : index
      %148 = vector.load %arg13[%c2_83, %c0_84, %c0_85] : memref<4x8x1xf32, #tpu.memory_space<vmem>>, vector<1x8x1xf32>
      %149 = vector.shape_cast %148 : vector<1x8x1xf32> to vector<8x1xf32>
      %150 = vector.shape_cast %123 : vector<8x1xf32> to vector<1x8x1xf32>
      tpu.vector_store %arg13[%c2_83, %c0_84, %c0_85], %150 {strides = array<i32>} : memref<4x8x1xf32, #tpu.memory_space<vmem>>, vector<1x8x1xf32>,
      %c0_86 = arith.constant 0 : index
      %c24 = arith.constant 24 : index
      %151 = vector.load %arg12[%c0_86, %c24] : memref<8x32xbf16, #tpu.memory_space<vmem>>, vector<8x8xbf16>
      %152 = vector.extract_strided_slice %20 {offsets = [0, 24], sizes = [8, 8], strides = [1, 1]} : vector<8x64xbf16> to vector<8x8xbf16>
      %153 = vector.extract_strided_slice %20 {offsets = [0, 56], sizes = [8, 8], strides = [1, 1]} : vector<8x64xbf16> to vector<8x8xbf16>
      %154 = tpu.transpose %152, [1, 0] : vector<8x8xbf16> -> vector<8x8xbf16>
      %cst_87 = arith.constant dense<0.000000e+00> : vector<8x8xf32>
      %155 = tpu.matmul %151, %154, %cst_87 {dimension_numbers = #tpu.dot_dimension_numbers<[1], [0], [0], [1], [0, 0, 1, 1], [], []>} : vector<8x8xbf16>, vector<8x8xbf16>, vector<8x8xf32> -> vector<8x8xf32>
      %cst_88 = arith.constant 0.353553385 : f32
      %156 = vector.broadcast %cst_88 : f32 to vector<8x8xf32>
      %157 = arith.mulf %155, %156 : vector<8x8xf32>
      %cst_89 = arith.constant 0xFF800000 : f32
      %158 = vector.broadcast %cst_89 : f32 to vector<8x8xf32>
      %159 = arith.select %27, %157, %158 : vector<8x8xi1>, vector<8x8xf32>
      %c3 = arith.constant 3 : index
      %c0_90 = arith.constant 0 : index
      %c0_91 = arith.constant 0 : index
      %160 = vector.load %arg13[%c3, %c0_90, %c0_91] : memref<4x8x1xf32, #tpu.memory_space<vmem>>, vector<1x8x1xf32>
      %161 = vector.shape_cast %160 : vector<1x8x1xf32> to vector<8x1xf32>
      %cst_92 = arith.constant dense<0xFF800000> : vector<8xf32>
      %162 = vector.multi_reduction <maximumf>, %159, %cst_92 [1] : vector<8x8xf32> to vector<8xf32>
      %163 = vector.shape_cast %162 : vector<8xf32> to vector<8x1xf32>
      %164 = arith.maximumf %161, %163 : vector<8x1xf32>
      %165 = arith.subf %161, %164 : vector<8x1xf32>
      %166 = math.exp %165 : vector<8x1xf32>
      %167 = vector.broadcast %164 : vector<8x1xf32> to vector<8x8xf32>
      %168 = arith.subf %159, %167 : vector<8x8xf32>
      %169 = math.exp %168 : vector<8x8xf32>
      %c3_93 = arith.constant 3 : index
      %c0_94 = arith.constant 0 : index
      %c0_95 = arith.constant 0 : index
      %170 = vector.load %arg14[%c3_93, %c0_94, %c0_95] : memref<4x8x1xf32, #tpu.memory_space<vmem>>, vector<1x8x1xf32>
      %171 = vector.shape_cast %170 : vector<1x8x1xf32> to vector<8x1xf32>
      %172 = arith.mulf %166, %171 : vector<8x1xf32>
      %cst_96 = arith.constant dense<0.000000e+00> : vector<8xf32>
      %173 = vector.multi_reduction <add>, %169, %cst_96 [1] : vector<8x8xf32> to vector<8xf32>
      %174 = vector.shape_cast %173 : vector<8xf32> to vector<8x1xf32>
      %175 = arith.addf %172, %174 : vector<8x1xf32>
      %c3_97 = arith.constant 3 : index
      %c0_98 = arith.constant 0 : index
      %c0_99 = arith.constant 0 : index
      %176 = vector.load %arg14[%c3_97, %c0_98, %c0_99] : memref<4x8x1xf32, #tpu.memory_space<vmem>>, vector<1x8x1xf32>
      %177 = vector.shape_cast %176 : vector<1x8x1xf32> to vector<8x1xf32>
      %178 = vector.shape_cast %175 : vector<8x1xf32> to vector<1x8x1xf32>
      tpu.vector_store %arg14[%c3_97, %c0_98, %c0_99], %178 {strides = array<i32>} : memref<4x8x1xf32, #tpu.memory_space<vmem>>, vector<1x8x1xf32>,
      %c3_100 = arith.constant 3 : index
      %c0_101 = arith.constant 0 : index
      %c0_102 = arith.constant 0 : index
      %179 = vector.load %arg15[%c3_100, %c0_101, %c0_102] : memref<4x8x8xf32, #tpu.memory_space<vmem>>, vector<1x8x8xf32>
      %180 = vector.shape_cast %179 : vector<1x8x8xf32> to vector<8x8xf32>
      %181 = vector.broadcast %166 : vector<8x1xf32> to vector<8x8xf32>
      %182 = arith.mulf %181, %180 : vector<8x8xf32>
      %183 = arith.truncf %169 : vector<8x8xf32> to vector<8x8xbf16>
      %cst_103 = arith.constant dense<0.000000e+00> : vector<8x8xf32>
      %184 = tpu.matmul %183, %153, %cst_103 {dimension_numbers = #tpu.dot_dimension_numbers<[1], [0], [0], [1], [0, 0, 1, 1], [], []>} : vector<8x8xbf16>, vector<8x8xbf16>, vector<8x8xf32> -> vector<8x8xf32>
      %185 = arith.addf %182, %184 : vector<8x8xf32>
      %c3_104 = arith.constant 3 : index
      %c0_105 = arith.constant 0 : index
      %c0_106 = arith.constant 0 : index
      %186 = vector.load %arg15[%c3_104, %c0_105, %c0_106] : memref<4x8x8xf32, #tpu.memory_space<vmem>>, vector<1x8x8xf32>
      %187 = vector.shape_cast %186 : vector<1x8x8xf32> to vector<8x8xf32>
      %188 = vector.shape_cast %185 : vector<8x8xf32> to vector<1x8x8xf32>
      tpu.vector_store %arg15[%c3_104, %c0_105, %c0_106], %188 {strides = array<i32>} : memref<4x8x8xf32, #tpu.memory_space<vmem>>, vector<1x8x8xf32>,
      %c3_107 = arith.constant 3 : index
      %c0_108 = arith.constant 0 : index
      %c0_109 = arith.constant 0 : index
      %189 = vector.load %arg13[%c3_107, %c0_108, %c0_109] : memref<4x8x1xf32, #tpu.memory_space<vmem>>, vector<1x8x1xf32>
      %190 = vector.shape_cast %189 : vector<1x8x1xf32> to vector<8x1xf32>
      %191 = vector.shape_cast %164 : vector<8x1xf32> to vector<1x8x1xf32>
      tpu.vector_store %arg13[%c3_107, %c0_108, %c0_109], %191 {strides = array<i32>} : memref<4x8x1xf32, #tpu.memory_space<vmem>>, vector<1x8x1xf32>,
    } else {
    }
    %c0_i32_4 = arith.constant 0 : i32
    %10 = arith.cmpi eq, %arg2, %c0_i32_4 : i32
    %11 = arith.extui %10 : i1 to i32
    %c0_i32_5 = arith.constant 0 : i32
    %12 = arith.cmpi ne, %11, %c0_i32_5 : i32
    scf.if %12 {
      %cst = arith.constant 0.000000e+00 : f32
      %13 = vector.broadcast %cst : f32 to vector<8x32xf32>
      %c0 = arith.constant 0 : index
      %c0_6 = arith.constant 0 : index
      %c0_7 = arith.constant 0 : index
      %14 = vector.load %arg14[%c0, %c0_6, %c0_7] : memref<4x8x1xf32, #tpu.memory_space<vmem>>, vector<1x8x1xf32>
      %15 = vector.shape_cast %14 : vector<1x8x1xf32> to vector<8x1xf32>
      %16 = tpu.reciprocal %15 {approx = true} : vector<8x1xf32> -> vector<8x1xf32>
      %c0_8 = arith.constant 0 : index
      %c0_9 = arith.constant 0 : index
      %c0_10 = arith.constant 0 : index
      %17 = vector.load %arg15[%c0_8, %c0_9, %c0_10] : memref<4x8x8xf32, #tpu.memory_space<vmem>>, vector<1x8x8xf32>
      %18 = vector.shape_cast %17 : vector<1x8x8xf32> to vector<8x8xf32>
      %19 = vector.broadcast %16 : vector<8x1xf32> to vector<8x8xf32>
      %20 = arith.mulf %18, %19 : vector<8x8xf32>
      %21 = arith.truncf %20 : vector<8x8xf32> to vector<8x8xbf16>
      %c0_11 = arith.constant 0 : index
      %c0_12 = arith.constant 0 : index
      %c0_13 = arith.constant 0 : index
      %22 = vector.load %arg9[%c0_11, %c0_12, %c0_13] : memref<4x8x32xbf16, #tpu.memory_space<vmem>>, vector<1x8x32xbf16>
      %23 = vector.shape_cast %22 : vector<1x8x32xbf16> to vector<8x32xbf16>
      %cst_14 = arith.constant dense<0.000000e+00> : vector<8x32xf32>
      %24 = tpu.matmul %21, %23, %cst_14 {dimension_numbers = #tpu.dot_dimension_numbers<[1], [0], [0], [1], [0, 0, 1, 1], [], []>} : vector<8x8xbf16>, vector<8x32xbf16>, vector<8x32xf32> -> vector<8x32xf32>
      %25 = arith.addf %13, %24 : vector<8x32xf32>
      %c1 = arith.constant 1 : index
      %c0_15 = arith.constant 0 : index
      %c0_16 = arith.constant 0 : index
      %26 = vector.load %arg14[%c1, %c0_15, %c0_16] : memref<4x8x1xf32, #tpu.memory_space<vmem>>, vector<1x8x1xf32>
      %27 = vector.shape_cast %26 : vector<1x8x1xf32> to vector<8x1xf32>
      %28 = tpu.reciprocal %27 {approx = true} : vector<8x1xf32> -> vector<8x1xf32>
      %c1_17 = arith.constant 1 : index
      %c0_18 = arith.constant 0 : index
      %c0_19 = arith.constant 0 : index
      %29 = vector.load %arg15[%c1_17, %c0_18, %c0_19] : memref<4x8x8xf32, #tpu.memory_space<vmem>>, vector<1x8x8xf32>
      %30 = vector.shape_cast %29 : vector<1x8x8xf32> to vector<8x8xf32>
      %31 = vector.broadcast %28 : vector<8x1xf32> to vector<8x8xf32>
      %32 = arith.mulf %30, %31 : vector<8x8xf32>
      %33 = arith.truncf %32 : vector<8x8xf32> to vector<8x8xbf16>
      %c1_20 = arith.constant 1 : index
      %c0_21 = arith.constant 0 : index
      %c0_22 = arith.constant 0 : index
      %34 = vector.load %arg9[%c1_20, %c0_21, %c0_22] : memref<4x8x32xbf16, #tpu.memory_space<vmem>>, vector<1x8x32xbf16>
      %35 = vector.shape_cast %34 : vector<1x8x32xbf16> to vector<8x32xbf16>
      %cst_23 = arith.constant dense<0.000000e+00> : vector<8x32xf32>
      %36 = tpu.matmul %33, %35, %cst_23 {dimension_numbers = #tpu.dot_dimension_numbers<[1], [0], [0], [1], [0, 0, 1, 1], [], []>} : vector<8x8xbf16>, vector<8x32xbf16>, vector<8x32xf32> -> vector<8x32xf32>
      %37 = arith.addf %25, %36 : vector<8x32xf32>
      %c2 = arith.constant 2 : index
      %c0_24 = arith.constant 0 : index
      %c0_25 = arith.constant 0 : index
      %38 = vector.load %arg14[%c2, %c0_24, %c0_25] : memref<4x8x1xf32, #tpu.memory_space<vmem>>, vector<1x8x1xf32>
      %39 = vector.shape_cast %38 : vector<1x8x1xf32> to vector<8x1xf32>
      %40 = tpu.reciprocal %39 {approx = true} : vector<8x1xf32> -> vector<8x1xf32>
      %c2_26 = arith.constant 2 : index
      %c0_27 = arith.constant 0 : index
      %c0_28 = arith.constant 0 : index
      %41 = vector.load %arg15[%c2_26, %c0_27, %c0_28] : memref<4x8x8xf32, #tpu.memory_space<vmem>>, vector<1x8x8xf32>
      %42 = vector.shape_cast %41 : vector<1x8x8xf32> to vector<8x8xf32>
      %43 = vector.broadcast %40 : vector<8x1xf32> to vector<8x8xf32>
      %44 = arith.mulf %42, %43 : vector<8x8xf32>
      %45 = arith.truncf %44 : vector<8x8xf32> to vector<8x8xbf16>
      %c2_29 = arith.constant 2 : index
      %c0_30 = arith.constant 0 : index
      %c0_31 = arith.constant 0 : index
      %46 = vector.load %arg9[%c2_29, %c0_30, %c0_31] : memref<4x8x32xbf16, #tpu.memory_space<vmem>>, vector<1x8x32xbf16>
      %47 = vector.shape_cast %46 : vector<1x8x32xbf16> to vector<8x32xbf16>
      %cst_32 = arith.constant dense<0.000000e+00> : vector<8x32xf32>
      %48 = tpu.matmul %45, %47, %cst_32 {dimension_numbers = #tpu.dot_dimension_numbers<[1], [0], [0], [1], [0, 0, 1, 1], [], []>} : vector<8x8xbf16>, vector<8x32xbf16>, vector<8x32xf32> -> vector<8x32xf32>
      %49 = arith.addf %37, %48 : vector<8x32xf32>
      %c3 = arith.constant 3 : index
      %c0_33 = arith.constant 0 : index
      %c0_34 = arith.constant 0 : index
      %50 = vector.load %arg14[%c3, %c0_33, %c0_34] : memref<4x8x1xf32, #tpu.memory_space<vmem>>, vector<1x8x1xf32>
      %51 = vector.shape_cast %50 : vector<1x8x1xf32> to vector<8x1xf32>
      %52 = tpu.reciprocal %51 {approx = true} : vector<8x1xf32> -> vector<8x1xf32>
      %c3_35 = arith.constant 3 : index
      %c0_36 = arith.constant 0 : index
      %c0_37 = arith.constant 0 : index
      %53 = vector.load %arg15[%c3_35, %c0_36, %c0_37] : memref<4x8x8xf32, #tpu.memory_space<vmem>>, vector<1x8x8xf32>
      %54 = vector.shape_cast %53 : vector<1x8x8xf32> to vector<8x8xf32>
      %55 = vector.broadcast %52 : vector<8x1xf32> to vector<8x8xf32>
      %56 = arith.mulf %54, %55 : vector<8x8xf32>
      %57 = arith.truncf %56 : vector<8x8xf32> to vector<8x8xbf16>
      %c3_38 = arith.constant 3 : index
      %c0_39 = arith.constant 0 : index
      %c0_40 = arith.constant 0 : index
      %58 = vector.load %arg9[%c3_38, %c0_39, %c0_40] : memref<4x8x32xbf16, #tpu.memory_space<vmem>>, vector<1x8x32xbf16>
      %59 = vector.shape_cast %58 : vector<1x8x32xbf16> to vector<8x32xbf16>
      %cst_41 = arith.constant dense<0.000000e+00> : vector<8x32xf32>
      %60 = tpu.matmul %57, %59, %cst_41 {dimension_numbers = #tpu.dot_dimension_numbers<[1], [0], [0], [1], [0, 0, 1, 1], [], []>} : vector<8x8xbf16>, vector<8x32xbf16>, vector<8x32xf32> -> vector<8x32xf32>
      %61 = arith.addf %49, %60 : vector<8x32xf32>
      %c0_42 = arith.constant 0 : index
      %c0_43 = arith.constant 0 : index
      %62 = vector.load %arg10[%c0_42, %c0_43] : memref<1x32xf32, #tpu.memory_space<vmem>>, vector<1x32xf32>
      %63 = vector.broadcast %62 : vector<1x32xf32> to vector<8x32xf32>
      %64 = arith.addf %61, %63 : vector<8x32xf32>
      %c0_44 = arith.constant 0 : index
      %c0_45 = arith.constant 0 : index
      %c0_46 = arith.constant 0 : index
      %65 = vector.load %arg11[%c0_44, %c0_45, %c0_46] : memref<1x8x32xf32, #tpu.memory_space<vmem>>, vector<1x8x32xf32>
      %66 = vector.shape_cast %65 : vector<1x8x32xf32> to vector<8x32xf32>
      %67 = vector.shape_cast %64 : vector<8x32xf32> to vector<1x8x32xf32>
      tpu.vector_store %arg11[%c0_44, %c0_45, %c0_46], %67 {strides = array<i32>} : memref<1x8x32xf32, #tpu.memory_space<vmem>>, vector<1x8x32xf32>,
    } else {
    }
    return
  }
  func.func @transform_0(%arg0: i32, %arg1: i32, %arg2: i32) -> (i32, i32, i32) {
    %c0_i32 = arith.constant 0 : i32
    %c0_i32_0 = arith.constant 0 : i32
    return %arg0, %arg1, %c0_i32 : i32, i32, i32
  }
  func.func @transform_1(%arg0: i32, %arg1: i32, %arg2: i32) -> (i32, i32, i32) {
    %c0_i32 = arith.constant 0 : i32
    %c0_i32_0 = arith.constant 0 : i32
    return %arg0, %arg2, %c0_i32 : i32, i32, i32
  }
  func.func @transform_2(%arg0: i32, %arg1: i32, %arg2: i32) -> (i32, i32) {
    %c0_i32 = arith.constant 0 : i32
    %c0_i32_0 = arith.constant 0 : i32
    %c0_i32_1 = arith.constant 0 : i32
    return %c0_i32, %c0_i32_0 : i32, i32
  }
  func.func @transform_3(%arg0: i32, %arg1: i32, %arg2: i32) -> (i32, i32) {
    %c0_i32 = arith.constant 0 : i32
    %c0_i32_0 = arith.constant 0 : i32
    %c0_i32_1 = arith.constant 0 : i32
    return %c0_i32, %c0_i32_0 : i32, i32
  }
  func.func @transform_4(%arg0: i32, %arg1: i32, %arg2: i32) -> (i32, i32) {
    %c0_i32 = arith.constant 0 : i32
    %c0_i32_0 = arith.constant 0 : i32
    %c0_i32_1 = arith.constant 0 : i32
    return %c0_i32, %c0_i32_0 : i32, i32
  }
  func.func @transform_5(%arg0: i32, %arg1: i32, %arg2: i32) -> (i32, i32) {
    %c0_i32 = arith.constant 0 : i32
    %c0_i32_0 = arith.constant 0 : i32
    %c0_i32_1 = arith.constant 0 : i32
    return %c0_i32, %c0_i32_0 : i32, i32
  }
  func.func @transform_6(%arg0: i32, %arg1: i32, %arg2: i32) -> (i32, i32, i32) {
    %c0_i32 = arith.constant 0 : i32
    %c0_i32_0 = arith.constant 0 : i32
    %c0_i32_1 = arith.constant 0 : i32
    %c0_i32_2 = arith.constant 0 : i32
    return %c0_i32, %c0_i32_0, %c0_i32_1 : i32, i32, i32
  }
  func.func @transform_7(%arg0: i32, %arg1: i32, %arg2: i32) -> (i32, i32) {
    %c0_i32 = arith.constant 0 : i32
    %c0_i32_0 = arith.constant 0 : i32
    %c0_i32_1 = arith.constant 0 : i32
    return %c0_i32, %c0_i32_0 : i32, i32
  }
  func.func @transform_8(%arg0: i32, %arg1: i32, %arg2: i32) -> (i32, i32, i32) {
    %c0_i32 = arith.constant 0 : i32
    %c0_i32_0 = arith.constant 0 : i32
    return %arg0, %arg1, %c0_i32 : i32, i32, i32
  }
}

</mosaic_0001>

<bundles_post_ra>
// kernel: tpu_custom_call.1
= control target key start
LH: loop header
LB: loop body
LE: loop exit
PB: predicated region body
PF: predicated region fallthrough
CT: control target
= control target key end

     0   :  { %s1974_s0 = inlined_call_operand.hbm [shape: bf16[2,8,32], index: 0, kind: input, shape index: {}]   ;;  %s1975_s1 = inlined_call_operand.hbm [shape: bf16[2,8,32], index: 1, kind: input, shape index: {}]   ;;  %s1976_s2 = inlined_call_operand.hbm [shape: bf16[32,32], index: 2, kind: input, shape index: {}]   ;;  %s1977_s3 = inlined_call_operand.vmem [shape: f32[1,32], index: 3, kind: input, shape index: {}]   ;;  %s1978_s4 = inlined_call_operand.hbm [shape: bf16[32,64], index: 4, kind: input, shape index: {}]   ;;  %s1979_s5 = inlined_call_operand.vmem [shape: f32[1,64], index: 5, kind: input, shape index: {}]   ;;  %s1980_s6 = inlined_call_operand.hbm [shape: bf16[4,8,32], index: 6, kind: input, shape index: {}]   ;;  %s1981_s7 = inlined_call_operand.vmem [shape: f32[1,32], index: 7, kind: input, shape index: {}]   ;;  %s1982_s8 = inlined_call_operand.hbm [shape: f32[2,8,32], index: 8, kind: output, shape index: {}]  }
   0x1   :  { %1988 = sst [smem:[#allocation27_spill]] %s1976_s2 }
   0x2   :  { %1989 = sst [smem:[#allocation28_spill]] %s1978_s4 }
   0x3   :  { %1990 = sst [smem:[#allocation29_spill]] %s1980_s6 }
   0x4   :  { %13 = vsyncpa [#allocation7], 0 }
   0x5   :  { %15 = vsyncpa [#allocation7 + $0x1], 0 }
   0x6   :  { %16 = vsyncpa [#allocation10], 0 }
   0x7   :  { %18 = vsyncpa [#allocation10 + $0x1], 0 }
   0x8   :  { %19 = vsyncpa [#allocation13], 0 }
   0x9   :  { %20 = vsyncpa [#allocation8], 0 }
   0xa   :  { %22 = vsyncpa [#allocation8 + $0x1], 0  ;;  %s1694_s27 = smov 0   ;;  %s1696_s28 = smov 0  }
   0xb   :  { %s1698_s29 = smov 0   ;;  %s1700_s30 = smov 0  }
   0xc   :  { %s1702_s9 = smov 0   ;;  %s1704_s10 = smov 0  }
   0xd LB: > { %1991 = sst [smem:[#allocation21_spill]] %s1612_s27  ;;  %s1725_s11 = sadd.s32 4294967295, %s1632_s10   ;;  %s1632_s10 = sphi %s1704_s10, %s28_s10   ;;  %s1628_s9 = sphi %s1702_s9, %s2011_s9   ;;  %s1624_s30 = sphi %s1700_s30, %s2010_s30   ;;  %s1620_s29 = sphi %s1698_s29, %s2009_s29   ;;  %s1616_s28 = sphi %s1696_s28, %s2013_s28   ;;  %s1612_s27 = sphi %s1694_s27, %s2012_s27  }
   0xe   : > { %1992 = sst [smem:[#allocation22_spill]] %s1620_s29  ;;  %p1194_p0 = scmp.ge.s32.totalorder %s1632_s10, 1 }
   0xf   : > { %1993 = sst [smem:[#allocation23_spill]] %s1628_s9  ;;  %p70_p1 = scmp.eq.s32.totalorder %s1725_s11, 0 }
  0x10   : > { %p262_p2 = scmp.lt.s32.totalorder %s1632_s10, 3  ;;  %s1994_s2 = sld [smem:[#allocation27_spill]] }
  0x11   : > { %s1634_s16 = smov [#allocation11]   ;;  %p1198_p6 = scmp.ge.s32.totalorder %s1632_s10, 2 }
  0x12   : > { %p1733_p3 = pnand %p1194_p0, %p262_p2  ;;  %s275_s17 = sshll.u32 %s1634_s16, 4  ;;  %s276_s17 = int_to_ptr.vmem [resolvable:$true] %s275_s17 }
  0x13   : > { %s1997_s4 = sld [smem:[#allocation28_spill]]  ;;  %s1635_s22 = smov 64  }
  0x14   : > { %p1266_p4 = pneg %p1733_p3  ;;  %s1636_s23 = smov 4  }
  0x15   : > { %s1637_s24 = smov [#allocation12]   ;;  %s1998_s6 = sld [smem:[#allocation29_spill]] }
  0x16   : > { %s273_s14 = sshll.u32 %s1994_s2, 4  ;;  %p1741_p5 = pnand %p1266_p4, %p70_p1  ;;  %s274_s14 = int_to_ptr.hbm [resolvable:$true] %s273_s14 }
  0x17   : > { %s292_s25 = sshll.u32 %s1637_s24, 4  ;;  %s1638_s16 = smov [#allocation14]   ;;  %s293_s25 = int_to_ptr.vmem [resolvable:$true] %s292_s25 }
  0x18   : > { %1269 = dma.hbm_to_vmem [thread:$0]  (!%p1741_p5), %s274_s14, 256, %s276_s17, [#allocation10], %s1635_s22, %s1635_s22, %s1636_s23  }
  0x19   : > { %s290_s21 = sshll.u32 %s1997_s4, 4  ;;  %s309_s19 = sshll.u32 %s1638_s16, 4  ;;  %s291_s21 = int_to_ptr.hbm [resolvable:$true] %s290_s21  ;;  %s310_s19 = int_to_ptr.vmem [resolvable:$true] %s309_s19 }
  0x1a   : > { %1272 = dma.hbm_to_vmem [thread:$0]  (!%p1741_p5), %s291_s21, 256, %s293_s25, [#allocation13], %s1635_s22, %s1635_s22, %s1636_s23  }
  0x1b   : > { %s307_s13 = sshll.u32 %s1998_s6, 4  ;;  %s1193_s14 = sadd.s32 4294967294, %s1632_s10   ;;  %s308_s13 = int_to_ptr.hbm [resolvable:$true] %s307_s13 }
  0x1c   : > { %1275 = dma.hbm_to_vmem [thread:$0]  (!%p1741_p5), %s308_s13, 256, %s310_s19, [#allocation13], %s1635_s22, %s1635_s22, %s1636_s23  }
  0x1d   : > { %s47_s17 = sadd.s32 1, %s1628_s9  ;;  %s56_s20 = sadd.s32 1, %s1620_s29 }
  0x1e   : > { %p49_p7 = scmp.ge.s32.totalorder %s47_s17, 2  ;;  %p63_p8 = scmp.ne.s32.totalorder %s1620_s29, %s1616_s28 }
  0x1f   : > { %p64_p9 = scmp.eq.s32.totalorder %s1632_s10, 0  ;;  %p69_p10 = scmp.ne.s32.totalorder %s1616_s28, %s1612_s27 }
  0x20   : > { %s2015_s17 = smov (%p49_p7, %s47_s17), 0  ;;  %p249_p13 = scmp.eq.s32.totalorder %s1725_s11, 1 }
  0x21   : > { %1999 = sst [smem:[#allocation24_spill]] %s2015_s17  ;;  %p1768_p11 = por %p64_p9, %p63_p8 }
  0x22   : > { %p1774_p12 = por %p70_p1, %p69_p10  ;;  %s51_s22 = ssub.s32 %s1628_s9, %s2015_s17 }
  0x23   : > { %p54_p0 = scmp.eq.s32.totalorder %s51_s22, 0  ;;  %p255_p2 = scmp.eq.s32.totalorder %s1193_s14, 1 }
  0x24   : > { %p1781_p4 = por %p249_p13, %p63_p8  ;;  %p1290_p5 = scmp.lt.s32.totalorder %s1632_s10, 2 }
  0x25   : > { %s1787_s24 = scalar_select %p54_p0, %s1620_s29, %s56_s20  }
  0x26   : > { %p1789_p7 = por %p255_p2, %p69_p10  ;;  %s326_s26 = sand.u32 1, %s1620_s29  }
  0x27   : > { %2003 = sst [smem:[#allocation25_spill]] %s1787_s24  ;;  %s1199_s12 = sshll.u32 %s326_s26, 2 }
  0x28   : > { %s2004_s25 = scalar_select %p1789_p7, 1, 0 }
  0x29   : > { %s1200_s13 = sshll.u32 %s1628_s9, 2  ;;  %s330_s14 = scalar_lea.vmem [#allocation6], %s1199_s12 }
  0x2a   : > { %2005 = sst [smem:[#allocation26_spill]] %s2004_s25  ;;  %s335_s22 = scalar_lea.hbm %s1974_s0, %s1200_s13 }
  0x2b   : > { %s339_s2 = sshll.u32 %s330_s14, 4  ;;  %s337_s4 = sshll.u32 %s335_s22, 4  ;;  %s340_s2 = int_to_ptr.vmem [resolvable:$true] %s339_s2  ;;  %s338_s4 = int_to_ptr.hbm [resolvable:$true] %s337_s4 }
  0x2c   : > { %p1277_p8 = pnand %p1290_p5, %p1768_p11  ;;  %s355_s17 = scalar_lea.hbm %s1975_s1, %s1200_s13 }
  0x2d   : > { %s346_s24 = sand.u32 1, %s1632_s10   ;;  %s327_s25 = scalar_lea.sflag [#allocation7], %s326_s26 }
  0x2e   : > { %1279 = dma.hbm_to_vmem [thread:$0]  (!%p1277_p8), %s338_s4, 64, %s340_s2, %s327_s25  }
  0x2f   : > { %s357_s29 = sshll.u32 %s355_s17, 4  ;;  %s350_s9 = scalar_lea.vmem [#allocation9], %s1199_s12  ;;  %s358_s29 = int_to_ptr.hbm [resolvable:$true] %s357_s29 }
  0x30   : > { %s359_s27 = sshll.u32 %s350_s9, 4  ;;  %s347_s16 = scalar_lea.sflag [#allocation10], %s346_s24  ;;  %s360_s27 = int_to_ptr.vmem [resolvable:$true] %s359_s27 }
  0x31   : > { %1282 = dma.hbm_to_vmem [thread:$0]  (!%p1277_p8), %s358_s29, 64, %s360_s27, %s347_s16  }
  0x32   : > { %368 = sbr.rel (%p1733_p3) target bundleno = 1366 (0x556), region = 52  ;;  %s1807_s21 = sand.u32 (!%p1733_p3), 1, %s1616_s28  }
  0x33   : > { %s1204_s6 = sshll.u32 (!%p1733_p3), %s1807_s21, 2  ;;  %s371_s13 = scalar_lea.sflag (!%p1733_p3), [#allocation7], %s1807_s21 }
  0x34   : > { %s374_s26 = scalar_lea.vmem (!%p1733_p3), [#allocation6], %s1204_s6 }
  0x37   : > { %1591 = dma.done.wait (%p1774_p12), %s371_s13, 64  }
  0x38   : > { %1593 = vsyncadd (%p1774_p12), %s371_s13, 4294967232  ;;  %s380_s2 = sand.u32 1, %s1725_s11   ;;  %s384_s27 = scalar_lea.vmem [#allocation9], %s1204_s6 }
  0x39   : > { %s381_s4 = scalar_lea.sflag [#allocation10], %s380_s2 }
  0x3a   : > { %1595 = dma.done.wait (%p1774_p12), %s381_s4, 64  }
  0x3b   : > { %1597 = vsyncadd (%p1774_p12), %s381_s4, 4294967232 }
  0x3c   : > { %1599 = dma.done.wait (%p70_p1), [#allocation10], 256  }
  0x3d   : > { %1601 = vsyncadd (%p70_p1), [#allocation10], 4294967040 }
  0x3e   : > { %1603 = dma.done.wait (%p70_p1), [#allocation13], 512  }
  0x3f   : > { %1605 = vsyncadd (%p70_p1), [#allocation13], 4294966784  ;;  %v1245_v0 = vld [vmem:[#allocation11 + $0x8] sm:$0xff]  ;;  %v1247_v1 = vld [vmem:[#allocation12 + $0x8] sm:$0xff]  ;;  %vm466_vm0 = vcmask 261120   ;;  %vm484_vm1 = vcmask 257024   ;;  %v544_v37 = vlaneseq }
  0x40   : > { %v1244_v2 = vld [vmem:[#allocation11] sm:$0xff]  ;;  %476 = vmatpush.bf16.msra.mxu0 %v1245_v0  ;;  %536 = vmatpush.bf16.msra.mxu1 %v1247_v1  ;;  %v1246_v3 = vld [vmem:[#allocation12] sm:$0xff]  ;;  %v505_v5 = vld [vmem:[%s384_s27] sm:$0xf]  ;;  %vm495_vm2 = vcmask 64512   ;;  %s1639_s17 = smov 96  }
  0x41   : > { %v445_v4 = vld [vmem:[%s374_s26] sm:$0xf]  ;;  %v1361_v6 = vld [vmem:[%s1977_s3] ss:$0 sm:$0xff]  ;;  %s1640_s18 = smov 120   ;;  %s1641_s24 = smov 104  }
  0x42   : > { %v1362_v7 = vld [vmem:[%s1979_s5] ss:$0 sm:$0xff]  ;;  %s1642_s25 = smov 112   ;;  %vm616_vm3 = vcmask 1043456   ;;  %v1850_v38 = vshrl.u32 %v544_v37, 7  ;;  %v1852_v39 = vand.u32 127, %v544_v37 }
  0x43   : > { %vm486_vm5 = vcmask 7168   ;;  %v1643_v45 = vmov -inf   ;;  %v1644_v46 = vmov 0   ;;  %v1645_v47 = vmov 0.0   ;;  %s1646_s12 = smov 72   ;;  %s1647_s19 = smov 80  }
  0x44   : > { %477 = vmatpush.bf16.msra.mxu0 %v1244_v2  ;;  %537 = vmatpush.bf16.msra.mxu1 %v1246_v3  ;;  %vm552_vm4 = vcmp.le.s32.totalorder %v1852_v39, %v1850_v38  ;;  %487 = vst.msk [vmem:[#allocation3] sm:$0xff] %vm486_vm5, %v1643_v45  ;;  %s1648_s22 = smov 88   ;;  %s1209_s14 = sshll.u32 %s1807_s21, 3 }
  0x45   : > { %488 = vst.msk [vmem:[#allocation3 + $0x8] sm:$0xff] %vm486_vm5, %v1643_v45  ;;  %1358 = vset.pattern.permute.xlu0 %v1644_v46  ;;  %1359 = vset.pattern.permute.xlu1 %v1644_v46  ;;  %s1241_s20 = sshll.u32 %s1624_s30, 3  ;;  %s437_s4 = scalar_lea.vmem [#allocation15], %s1209_s14 }
  0x46   : > { %489 = vst.msk [vmem:[#allocation3 + $0x10] sm:$0xff] %vm486_vm5, %v1643_v45  ;;  %1360 = vset.pattern.permute.xlu2 %v1644_v46  ;;  %s1052_s13 = scalar_lea.hbm %s1982_s8, %s1241_s20  ;;  %s1054_s27 = sshll.u32 %s437_s4, 4  ;;  %s1055_s27 = int_to_ptr.vmem [resolvable:$true] %s1054_s27 }
  0x47   : > { %1218 = vmatmul.msk.bf16.vlgmr.msra.gmra.mxu0 %vm466_vm0, %v445_v4  ;;  %1227 = vmatmul.msk.bf16.vlgmr.msra.gmra.mxu1 %vm466_vm0, %v505_v5  ;;  %490 = vst.msk [vmem:[#allocation3 + $0x18] sm:$0xff] %vm486_vm5, %v1643_v45  ;;  %s1056_s29 = sshll.u32 %s1052_s13, 4  ;;  %s1041_s30 = scalar_lea.sflag [#allocation8], %s1807_s21  ;;  %s1057_s29 = int_to_ptr.hbm [resolvable:$true] %s1056_s29 }
  0x48   : > { %493 = vst.msk [vmem:[#allocation4 + $0x10] sm:$0xff] %vm486_vm5, %v1645_v47  ;;  %s1552_s9 = sshra.s32 %s1057_s29, 4  ;;  %s1553_s9 = int_to_ptr.hbm [resolvable:$true] %s1552_s9 }
  0x49   : > { %491 = vst.msk [vmem:[#allocation4] sm:$0xff] %vm486_vm5, %v1645_v47  ;;  %s1554_s11 = scalar_lea.hbm %s1553_s9, 8  ;;  %p1559_p10 = scmp.lt.s32.totalorder %s1553_s9, %s1982_s8 }
  0x4a   : > { %492 = vst.msk [vmem:[#allocation4 + $0x8] sm:$0xff] %vm486_vm5, %v1645_v47  ;;  %p1555_p1 = scmp.ne.s32.totalorder %s1553_s9, %s1554_s11 }
  0x4b   : > { %494 = vst.msk [vmem:[#allocation4 + $0x18] sm:$0xff] %vm486_vm5, %v1645_v47  ;;  %v576_v53 = vld [vmem:[#allocation3] sm:$0xff] }
  0x4c   : > { %496 = vst.msk [vmem:[#allocation5] sm:$0xff] %vm495_vm2, %v1645_v47  ;;  %p1556_p3 = pnand %p1555_p1, %p1781_p4 }
  0x4d   : > { %497 = vst.msk [vmem:[#allocation5 + $0x8] sm:$0xff] %vm495_vm2, %v1645_v47  ;;  %v753_v59 = vld [vmem:[#allocation3 + $0x10] sm:$0xff] }
  0x4e   : > { %498 = vst.msk [vmem:[#allocation5 + $0x10] sm:$0xff] %vm495_vm2, %v1645_v47  ;;  %p1557_p9 = pneg %p1556_p3 }
  0x4f   : > { %499 = vst.msk [vmem:[#allocation5 + $0x18] sm:$0xff] %vm495_vm2, %v1645_v47 }
  0xc4   : > { %v479_v8 = vpop.f32.mrf.mxu0  ;;  %v539_v9 = vpop.f32.mrf.mxu1 }
  0xc5   : > { %v480_v10 = vadd.f32 %v1361_v6, %v479_v8  ;;  %v540_v11 = vadd.f32 %v1362_v7, %v539_v9 }
  0xc7   : > { %v483_v12 = vpack.c.bf16 %v480_v10, %v480_v10  ;;  %v543_v13 = vpack.c.bf16 %v540_v11, %v540_v11 }
  0xc9   : > { %485 = vst.msk [vmem:[#allocation2] sm:$0xf] %vm484_vm1, %v483_v12  ;;  %v609_v14 = vunpack.c.l.b16 %v543_v13  ;;  %v559_v15 = vsel %vm495_vm2, %v543_v13, 0 }
  0xca   : > { %568 = vmatpush.bf16.xpose.msra.mxu2 %v559_v15 }
  0xcb   : > { %v1837_v16 = vpack.c.b16 %v609_v14, %v609_v14 }
  0xcc   : > { %v481_v17 = vpop.f32.mrf.mxu0  ;;  %v541_v18 = vpop.f32.mrf.mxu1 }
  0xcd   : > { %611 = vrot.lane.b32.xlu1 %v1837_v16, %s1639_s17 }
  0xd0   : > { %v553_v19 = vld [vmem:[#allocation2] sm:$0xf] }
  0xd1   : > { %v636_v20 = vld [vmem:[#allocation2] sm:$0xf]  ;;  %1228 = vmatmul.msk.bf16.vlgmr.msra.gmra.mxu2 %vm495_vm2, %v553_v19 }
  0xd2   : > { %v638_v21 = vunpack.c.l.b16 %v636_v20  ;;  %v810_v23 = vld [vmem:[#allocation2] sm:$0xf] }
  0xd3   : > { %v723_v24 = vld [vmem:[#allocation2] sm:$0xf]  ;;  %v812_v25 = vunpack.c.l.b16 %v810_v23 }
  0xd4   : > { %v639_v22 = vpack.c.b16 %v638_v21, %v638_v21  ;;  %v725_v26 = vunpack.c.l.b16 %v723_v24 }
  0xd5   : > { %642 = vrot.lane.b32.xlu1 %v1837_v16, %s1640_s18  ;;  %v813_v27 = vpack.c.b16 %v812_v25, %v812_v25 }
  0xd6   : > { %640 = vrot.lane.b32.xlu2 %v639_v22, %s1640_s18  ;;  %v726_v28 = vpack.c.b16 %v725_v26, %v725_v26  ;;  %s1558_s18 = scalar_lea.hbm %s1982_s8, 16 }
  0xd7   : > { %p1560_p11 = scmp.lt.s32.totalorder %s1558_s18, %s1554_s11 }
  0xd9   : > { %p1561_p12 = por %p1560_p11, %p1559_p10 }
  0xdb   : > { %p1562_p13 = pnand %p1561_p12, %p1557_p9 }
  0xdd   : > { %816 = vrot.lane.b32.xlu1 %v1837_v16, %s1641_s24 }
  0xde   : > { %729 = vrot.lane.b32.xlu2 %v1837_v16, %s1642_s25 }
  0xe5   : > { %814 = vrot.lane.b32.xlu1 %v813_v27, %s1641_s24 }
  0xe6   : > { %727 = vrot.lane.b32.xlu2 %v726_v28, %s1642_s25  ;;  %v770_v28 = vld [vmem:[#allocation4 + $0x10] sm:$0xff] }
 0x130   : > { %v1844_v29 = vpop.permute.xlu2 %640 }
 0x138   : > { %v730_v30 = vpop.permute.xlu2 %729 }
 0x139   : > { %v735_v31 = vsel %vm495_vm2, %v730_v30, 0 }
 0x13a   : > { %744 = vmatpush.bf16.xpose.msrb.mxu1 %v735_v31 }
 0x13f   : > { %v612_v32 = vpop.permute.xlu1 %611 }
 0x140   : > { %v728_v33 = vpop.permute.xlu2 %727  ;;  %v618_v34 = vsel %vm616_vm3, %v612_v32, 0  ;;  %v600_v32 = vld [vmem:[#allocation5] sm:$0xff] }
 0x141   : > { %1232 = vmatmul.msk.bf16.vlgmr.msrb.gmra.mxu1 %vm495_vm2, %v728_v33  ;;  %627 = vmatpush.bf16.msra.mxu3 %v618_v34 }
 0x147   : > { %v643_v35 = vpop.permute.xlu1 %642 }
 0x148   : > { %v648_v36 = vsel %vm495_vm2, %v643_v35, 0 }
 0x149   : > { %657 = vmatpush.bf16.xpose.msrb.mxu3 %v648_v36  ;;  %v666_v36 = vld [vmem:[#allocation3 + $0x8] sm:$0xff] }
 0x14f   : > { %v817_v57 = vpop.permute.xlu1 %816 }
 0x150   : > { %v822_v4 = vsel %vm495_vm2, %v817_v57, 0 }
 0x154   : > { %v570_v40 = vpop.f32.mrf.mxu2 }
 0x155   : > { %v574_v41 = vmul.f32 0.35355338, %v570_v40  ;;  %v840_v40 = vld [vmem:[#allocation3 + $0x18] sm:$0xff] }
 0x157   : > { %v575_v42 = vsel %vm552_vm4, %v574_v41, -inf  ;;  %v815_v58 = vpop.permute.xlu1 %814 }
 0x158   : > { %v577_v43 = vsel %vm495_vm2, %v575_v42, -inf }
 0x159   : > { %578 = vmax.xlane.f32.xlu0 %v577_v43 }
 0x15c   : > { %v572_v44 = vpop.f32.mrf.mxu2 }
 0x1be   : > { %v746_v48 = vpop.f32.mrf.mxu1 }
 0x1bf   : > { %v750_v49 = vmul.f32 0.35355338, %v746_v48 }
 0x1c1   : > { %v751_v50 = vsel %vm552_vm4, %v750_v49, -inf }
 0x1c2   : > { %v754_v51 = vsel %vm495_vm2, %v751_v50, -inf }
 0x1c3   : > { %755 = vmax.xlane.f32.xlu1 %v754_v51 }
 0x1c6   : > { %v748_v52 = vpop.f32.mrf.mxu1 }
 0x1cc   : > { %v579_v54 = vpop.xlane.xlu0 %578 }
 0x1cd   : > { %v580_v55 = vmax.f32 %v576_v53, %v579_v54 }
 0x1cf   : > { %v581_v56 = vsub.f32 %v576_v53, %v580_v55  ;;  %635 = vst.msk [vmem:[#allocation3] sm:$0xff] %vm486_vm5, %v580_v55  ;;  %586 = vperm.xlu0 %1358, %v580_v55  }
 0x1d1   : > { %v582_v10 = vmul.f32 1.442695, %v581_v56 }
 0x236   : > { %v756_v60 = vpop.xlane.xlu1 %755 }
 0x237   : > { %v757_v61 = vmax.f32 %v753_v59, %v756_v60 }
 0x239   : > { %v758_v62 = vsub.f32 %v753_v59, %v757_v61  ;;  %809 = vst.msk [vmem:[#allocation3 + $0x10] sm:$0xff] %vm486_vm5, %v757_v61  ;;  %763 = vperm.xlu1 %1359, %v757_v61  }
 0x23b   : > { %v759_v25 = vmul.f32 1.442695, %v758_v62 }
 0x241   : > { %873 = vrot.lane.b32.xlu1 %v1837_v16, %s1646_s12  ;;  %v587_v63 = vpop.permute.xlu0 %586 }
 0x242   : > { %v589_v0 = vsub.f32 %v575_v42, %v587_v63 }
 0x244   : > { %v590_v1 = vmul.f32 1.442695, %v589_v0 }
 0x246   : > { %1364 = vpow2.f32 %v590_v1 }
 0x24c   : > { %v1879_v2 = vpop.eup %1364 }
 0x24d   : > { %v607_v3 = vpack.c.bf16 %v1879_v2, %v1879_v2  ;;  %v594_v47 = vsel %vm495_vm2, %v1879_v2, 0.0 }
 0x24f   : > { %1229 = vmatmul.msk.bf16.vlgmr.msra.gmra.mxu3 %vm495_vm2, %v607_v3 }
 0x250   : > { %831 = vmatpush.bf16.xpose.msra.mxu3 %v822_v4 }
 0x25f   : > { %1230 = vmatmul.msk.bf16.vlgmr.msrb.gmra.mxu3 %vm495_vm2, %v1844_v29 }
 0x26f   : > { %1234 = vmatmul.msk.bf16.vlgmr.msra.gmra.mxu3 %vm495_vm2, %v815_v58 }
 0x2ab   : > { %v764_v5 = vpop.permute.xlu1 %763 }
 0x2ac   : > { %v766_v6 = vsub.f32 %v751_v50, %v764_v5  ;;  %v592_v5 = vld [vmem:[#allocation4] sm:$0xff] }
 0x2ae   : > { %v767_v7 = vmul.f32 1.442695, %v766_v6 }
 0x2b0   : > { %1366 = vpow2.f32 %v767_v7 }
 0x2b1   : > { %1368 = vpow2.f32 %v582_v10 }
 0x2b2   : > { %1370 = vpow2.f32 %v759_v25 }
 0x2b3   : > { %v874_v26 = vpop.permute.xlu1 %873 }
 0x2b4   : > { %v879_v52 = vsel %vm616_vm3, %v874_v26, 0  ;;  %v778_v26 = vld [vmem:[#allocation5 + $0x10] sm:$0xff] }
 0x2b6   : > { %v1367_v8 = vpop.eup %1366 }
 0x2b7   : > { %v772_v9 = vsel %vm495_vm2, %v1367_v8, 0.0  ;;  %v1889_v11 = vpop.eup %1368  ;;  %v785_v46 = vpack.c.bf16 %v1367_v8, %v1367_v8 }
 0x2b8   : > { %773 = vadd.xlane.f32.xlu1 %v772_v9  ;;  %v1371_v27 = vpop.eup %1370  ;;  %v593_v6 = vmul.f32 %v1889_v11, %v592_v5 }
 0x2b9   : > { %v771_v29 = vmul.f32 %v1371_v27, %v770_v28 }
 0x2d1   : > { %603 = vperm.xlu1 %1359, %v1889_v11  }
 0x2d2   : > { %v629_v12 = vpop.f32.mrf.mxu3 }
 0x2da   : > { %v631_v13 = vpop.f32.mrf.mxu3 }
 0x2db   : > { %v683_v13 = vld [vmem:[#allocation4 + $0x8] sm:$0xff] }
 0x2e2   : > { %v659_v14 = vpop.f32.mrf.mxu3 }
 0x2e3   : > { %v663_v15 = vmul.f32 0.35355338, %v659_v14 }
 0x2e5   : > { %v664_v17 = vsel %vm552_vm4, %v663_v15, -inf }
 0x2e6   : > { %v667_v18 = vsel %vm495_vm2, %v664_v17, -inf }
 0x2e7   : > { %668 = vmax.xlane.f32.xlu2 %v667_v18  ;;  %v978_v18 = vld [vmem:[#allocation14 + $0x8] sm:$0xf] }
 0x2ea   : > { %v661_v19 = vpop.f32.mrf.mxu3 }
 0x2eb   : > { %v983_v19 = vsel %vm616_vm3, %v978_v18, 0 }
 0x2ec   : > { %992 = vmatpush.bf16.msrb.mxu3 %v983_v19 }
 0x2f2   : > { %v833_v20 = vpop.f32.mrf.mxu3 }
 0x2f3   : > { %v837_v21 = vmul.f32 0.35355338, %v833_v20 }
 0x2f5   : > { %v838_v22 = vsel %vm552_vm4, %v837_v21, -inf  ;;  %v857_v21 = vld [vmem:[#allocation4 + $0x18] sm:$0xff] }
 0x2f6   : > { %v841_v23 = vsel %vm495_vm2, %v838_v22, -inf }
 0x2f7   : > { %842 = vmax.xlane.f32.xlu0 %v841_v23 }
 0x2fa   : > { %v835_v24 = vpop.f32.mrf.mxu3 }
 0x30b   : > { %786 = vrot.lane.b32.xlu0 %v1837_v16, %s1647_s19 }
 0x32b   : > { %v774_v30 = vpop.xlane.xlu1 %773 }
 0x32c   : > { %v775_v31 = vadd.f32 %v774_v30, %v771_v29 }
 0x32e   : > { %776 = vst.msk [vmem:[#allocation4 + $0x10] sm:$0xff] %vm486_vm5, %v775_v31  ;;  %v691_v31 = vld [vmem:[#allocation5 + $0x8] sm:$0xff] }
 0x335   : > { %v966_v1 = vld [vmem:[#allocation4 + $0x10] sm:$0xff] }
 0x343   : > { %v604_v33 = vpop.permute.xlu1 %603 }
 0x344   : > { %v606_v34 = vmul.f32 %v604_v33, %v600_v32 }
 0x346   : > { %v633_v35 = vadd.f32 %v629_v12, %v606_v34  ;;  %v865_v34 = vld [vmem:[#allocation5 + $0x18] sm:$0xff] }
 0x348   : > { %634 = vst.msk [vmem:[#allocation5] sm:$0xff] %vm495_vm2, %v633_v35 }
 0x35a   : > { %v669_v37 = vpop.xlane.xlu2 %668 }
 0x35b   : > { %v670_v38 = vmax.f32 %v666_v36, %v669_v37 }
 0x35d   : > { %v671_v39 = vsub.f32 %v666_v36, %v670_v38  ;;  %722 = vst.msk [vmem:[#allocation3 + $0x8] sm:$0xff] %vm486_vm5, %v670_v38  ;;  %676 = vperm.xlu2 %1360, %v670_v38  }
 0x35f   : > { %v672_v0 = vmul.f32 1.442695, %v671_v39 }
 0x365   : > { %699 = vrot.lane.b32.xlu2 %v1837_v16, %s1648_s22 }
 0x36a   : > { %v843_v41 = vpop.xlane.xlu0 %842 }
 0x36b   : > { %v844_v42 = vmax.f32 %v840_v40, %v843_v41 }
 0x36d   : > { %v845_v43 = vsub.f32 %v840_v40, %v844_v42  ;;  %896 = vst.msk [vmem:[#allocation3 + $0x18] sm:$0xff] %vm486_vm5, %v844_v42  ;;  %850 = vperm.xlu2 %1360, %v844_v42  }
 0x36f   : > { %v846_v62 = vmul.f32 1.442695, %v845_v43 }
 0x37d   : > { %v787_v44 = vpop.permute.xlu0 %786 }
 0x37e   : > { %v792_v45 = vsel %vm616_vm3, %v787_v44, 0 }
 0x37f   : > { %801 = vmatpush.bf16.msrb.mxu2 %v792_v45 }
 0x382   : > { %1233 = vmatmul.msk.bf16.vlgmr.msrb.gmra.mxu2 %vm495_vm2, %v785_v46 }
 0x396   : > { %595 = vadd.xlane.f32.xlu2 %v594_v47  ;;  %v910_v47 = vld [vmem:[#allocation14] sm:$0xf] }
 0x3b7   : > { %v677_v48 = vpop.permute.xlu2 %676 }
 0x3b8   : > { %v679_v16 = vsub.f32 %v664_v17, %v677_v48  ;;  %v950_v48 = vsel %vm616_vm3, %v910_v47, 0 }
 0x3b9   : > { %959 = vmatpush.bf16.msra.mxu2 %v950_v48 }
 0x3ba   : > { %v680_v49 = vmul.f32 1.442695, %v679_v16  ;;  %v902_v16 = vld [vmem:[#allocation5] sm:$0xff] }
 0x3bc   : > { %1372 = vpow2.f32 %v680_v49 }
 0x3bf   : > { %v700_v50 = vpop.permute.xlu2 %699 }
 0x3c0   : > { %v705_v51 = vsel %vm616_vm3, %v700_v50, 0 }
 0x3c1   : > { %714 = vmatpush.bf16.msrb.mxu0 %v705_v51 }
 0x3c2   : > { %v1373_v53 = vpop.eup %1372 }
 0x3c3   : > { %v685_v54 = vsel %vm495_vm2, %v1373_v53, 0.0  ;;  %v698_v55 = vpack.c.bf16 %v1373_v53, %v1373_v53 }
 0x3c4   : > { %686 = vadd.xlane.f32.xlu0 %v685_v54  ;;  %v1012_v54 = vld [vmem:[#allocation14 + $0xc] sm:$0xf] }
 0x3c5   : > { %888 = vmatpush.bf16.msra.mxu0 %v879_v52  ;;  %v924_v52 = vld [vmem:[#allocation14 + $0x4] sm:$0xf] }
 0x3c6   : > { %1231 = vmatmul.msk.bf16.vlgmr.msrb.gmra.mxu0 %vm495_vm2, %v698_v55  ;;  %v931_v53 = vsel %vm616_vm3, %v924_v52, 0  ;;  %v1017_v55 = vsel %vm616_vm3, %v1012_v54, 0 }
 0x3c7   : > { %v851_v56 = vpop.permute.xlu2 %850  ;;  %940 = vmatpush.bf16.msra.mxu1 %v931_v53 }
 0x3c8   : > { %v853_v57 = vsub.f32 %v838_v22, %v851_v56 }
 0x3c9   : > { %1026 = vmatpush.bf16.msrb.mxu0 %v1017_v55 }
 0x3ca   : > { %v854_v58 = vmul.f32 1.442695, %v853_v57 }
 0x3cc   : > { %1374 = vpow2.f32 %v854_v58 }
 0x3cd   : > { %1376 = vpow2.f32 %v846_v62 }
 0x3ce   : > { %1378 = vpow2.f32 %v672_v0 }
 0x3cf   : > { %1380 = vrcp.f32 %v966_v1 }
 0x3d2   : > { %v1375_v59 = vpop.eup %1374 }
 0x3d3   : > { %v872_v60 = vpack.c.bf16 %v1375_v59, %v1375_v59  ;;  %v859_v61 = vsel %vm495_vm2, %v1375_v59, 0.0  ;;  %v1377_v63 = vpop.eup %1376 }
 0x3d4   : > { %860 = vadd.xlane.f32.xlu2 %v859_v61  ;;  %v1379_v2 = vpop.eup %1378  ;;  %v858_v22 = vmul.f32 %v1377_v63, %v857_v21 }
 0x3d5   : > { %v1381_v3 = vpop.eup %1380  ;;  %v684_v14 = vmul.f32 %v1379_v2, %v683_v13 }
 0x3d6   : > { %1235 = vmatmul.msk.bf16.vlgmr.msra.gmra.mxu0 %vm495_vm2, %v872_v60 }
 0x3d8   : > { %781 = vperm.xlu0 %1358, %v1371_v27  }
 0x3e0   : > { %868 = vperm.xlu0 %1358, %v1377_v63  }
 0x3ec   : > { %694 = vperm.xlu2 %1360, %v1379_v2  }
 0x3f4   : > { %972 = vperm.xlu2 %1360, %v1381_v3  }
 0x405   : > { %v803_v4 = vpop.f32.mrf.mxu2 }
 0x409   : > { %v596_v7 = vpop.xlane.xlu2 %595 }
 0x40a   : > { %v597_v8 = vadd.f32 %v596_v7, %v593_v6 }
 0x40c   : > { %599 = vst.msk [vmem:[#allocation4] sm:$0xff] %vm486_vm5, %v597_v8  ;;  %v1363_v8 = vld [vmem:[%s1981_s7] ss:$0 sm:$0xff] }
 0x40d   : > { %v805_v9 = vpop.f32.mrf.mxu2 }
 0x413   : > { %v900_v10 = vld [vmem:[#allocation4] sm:$0xff] }
 0x414   : > { %1382 = vrcp.f32 %v900_v10 }
 0x41a   : > { %v1383_v12 = vpop.eup %1382 }
 0x41b   : > { %905 = vperm.xlu1 %1359, %v1383_v12  }
 0x437   : > { %v687_v15 = vpop.xlane.xlu0 %686 }
 0x438   : > { %v688_v17 = vadd.f32 %v687_v15, %v684_v14 }
 0x43a   : > { %689 = vst.msk [vmem:[#allocation4 + $0x8] sm:$0xff] %vm486_vm5, %v688_v17 }
 0x441   : > { %v912_v11 = vld [vmem:[#allocation4 + $0x8] sm:$0xff] }
 0x442   : > { %1384 = vrcp.f32 %v912_v11 }
 0x443   : > { %v716_v20 = vpop.f32.mrf.mxu0 }
 0x447   : > { %v861_v23 = vpop.xlane.xlu2 %860 }
 0x448   : > { %v1385_v24 = vpop.eup %1384  ;;  %v862_v25 = vadd.f32 %v861_v23, %v858_v22 }
 0x449   : > { %918 = vperm.xlu0 %1358, %v1385_v24  }
 0x44a   : > { %863 = vst.msk [vmem:[#allocation4 + $0x18] sm:$0xff] %vm486_vm5, %v862_v25  ;;  %v782_v28 = vpop.permute.xlu0 %781 }
 0x44b   : > { %v718_v27 = vpop.f32.mrf.mxu0  ;;  %v784_v29 = vmul.f32 %v782_v28, %v778_v26 }
 0x44d   : > { %v807_v30 = vadd.f32 %v803_v4, %v784_v29 }
 0x44f   : > { %808 = vst.msk [vmem:[#allocation5 + $0x10] sm:$0xff] %vm495_vm2, %v807_v30  ;;  %v695_v32 = vpop.permute.xlu2 %694 }
 0x450   : > { %v697_v33 = vmul.f32 %v695_v32, %v691_v31 }
 0x451   : > { %v1000_v35 = vld [vmem:[#allocation4 + $0x18] sm:$0xff] }
 0x452   : > { %v720_v36 = vadd.f32 %v716_v20, %v697_v33  ;;  %v869_v38 = vpop.permute.xlu0 %868  ;;  %1386 = vrcp.f32 %v1000_v35 }
 0x453   : > { %v890_v37 = vpop.f32.mrf.mxu0  ;;  %v871_v39 = vmul.f32 %v869_v38, %v865_v34 }
 0x454   : > { %721 = vst.msk [vmem:[#allocation5 + $0x8] sm:$0xff] %vm495_vm2, %v720_v36 }
 0x455   : > { %v894_v40 = vadd.f32 %v890_v37, %v871_v39 }
 0x456   : > { %v969_v41 = vld [vmem:[#allocation5 + $0x10] sm:$0xff] }
 0x457   : > { %895 = vst.msk [vmem:[#allocation5 + $0x18] sm:$0xff] %vm495_vm2, %v894_v40  ;;  %v973_v42 = vpop.permute.xlu2 %972 }
 0x458   : > { %v1387_v43 = vpop.eup %1386  ;;  %v975_v44 = vmul.f32 %v973_v42, %v969_v41 }
 0x459   : > { %1006 = vperm.xlu1 %1359, %v1387_v43  }
 0x45a   : > { %v976_v45 = vpack.c.bf16 %v975_v44, %v975_v44 }
 0x45b   : > { %v892_v46 = vpop.f32.mrf.mxu0  ;;  %v915_v57 = vld [vmem:[#allocation5 + $0x8] sm:$0xff] }
 0x45c   : > { %1238 = vmatmul.msk.bf16.vlgmr.msrb.gmra.mxu3 %vm495_vm2, %v976_v45 }
 0x45e   : > { %v1003_v60 = vld [vmem:[#allocation5 + $0x18] sm:$0xff] }
 0x48d   : > { %v906_v49 = vpop.permute.xlu1 %905 }
 0x48e   : > { %v908_v50 = vmul.f32 %v906_v49, %v902_v16 }
 0x490   : > { %v909_v51 = vpack.c.bf16 %v908_v50, %v908_v50 }
 0x492   : > { %1237 = vmatmul.msk.bf16.vlgmr.msra.gmra.mxu2 %vm495_vm2, %v909_v51 }
 0x4bb   : > { %v919_v56 = vpop.permute.xlu0 %918 }
 0x4bc   : > { %v921_v58 = vmul.f32 %v919_v56, %v915_v57 }
 0x4be   : > { %v922_v59 = vpack.c.bf16 %v921_v58, %v921_v58 }
 0x4c0   : > { %1236 = vmatmul.msk.bf16.vlgmr.msra.gmra.mxu1 %vm495_vm2, %v922_v59 }
 0x4cb   : > { %v1007_v61 = vpop.permute.xlu1 %1006 }
 0x4cc   : > { %v1009_v62 = vmul.f32 %v1007_v61, %v1003_v60 }
 0x4ce   : > { %v1010_v63 = vpack.c.bf16 %v1009_v62, %v1009_v62 }
 0x4d0   : > { %1239 = vmatmul.msk.bf16.vlgmr.msrb.gmra.mxu0 %vm495_vm2, %v1010_v63 }
 0x4df   : > { %v994_v0 = vpop.f32.mrf.mxu3 }
 0x4e7   : > { %v996_v1 = vpop.f32.mrf.mxu3 }
 0x515   : > { %v961_v2 = vpop.f32.mrf.mxu2 }
 0x51d   : > { %v963_v3 = vpop.f32.mrf.mxu2 }
 0x53d   : > { %v942_v4 = vpop.f32.mrf.mxu1 }
 0x53e   : > { %v962_v6 = vadd.f32 %v961_v2, %v942_v4 }
 0x540   : > { %v998_v7 = vadd.f32 %v994_v0, %v962_v6 }
 0x545   : > { %v944_v5 = vpop.f32.mrf.mxu1 }
 0x54d   : > { %v1028_v9 = vpop.f32.mrf.mxu0 }
 0x54e   : > { %v1032_v10 = vadd.f32 %v1028_v9, %v998_v7 }
 0x550   : > { %v1037_v12 = vadd.f32 %v1363_v8, %v1032_v10 }
 0x552   : > { %1039 = vst.msk [vmem:[%s437_s4] sm:$0xff] %vm466_vm0, %v1037_v12 }
 0x553   : > { %1565 = shalt.err (!%p1562_p13)
}
 0x554   : > { %1264 = dma.vmem_to_hbm [thread:$0]  (%p1781_p4), %s1055_s27, 128, %s1057_s29, %s1041_s30  }
 0x555   : > { %v1030_v13 = vpop.f32.mrf.mxu0 }
 0x556 PF: > { %s2006_s21 = sld [smem:[#allocation21_spill]]  ;;  %p1284_p0 = pnand %p1198_p6, %p1789_p7 }
 0x558   : > { %p1285_p2 = pneg %p1284_p0 }
 0x55c   : > { %s1068_s19 = sand.u32 1, %s2006_s21  }
 0x55d   : > { %s1069_s22 = scalar_lea.sflag [#allocation8], %s1068_s19 }
 0x55e   : > { %1607 = dma.done.wait (%p1285_p2), %s1069_s22, 128  }
 0x55f   : > { %1609 = vsyncadd (%p1285_p2), %s1069_s22, 4294967168  ;;  %s28_s10 = sadd.s32 1, %s1632_s10   ;;  %s2008_s14 = sld [smem:[#allocation22_spill]] }
 0x560   : > { %p25_p5 = scmp.ge.s32.totalorder %s28_s10, 4   ;;  %s2009_s29 = sld [smem:[#allocation25_spill]] }
 0x561   : > { %s2010_s30 = sld [smem:[#allocation23_spill]]  ;;  %s2012_s27 = smov %s1616_s28 }
 0x562   : > { %s2011_s9 = sld [smem:[#allocation24_spill]]  ;;  %27 = sbr.rel (!%p25_p5) target bundleno = 13 (0xd), region = 152 }
 0x565   : > { %s2013_s28 = smov %s2008_s14 }
 0x567   :  { %1075 = vsyncpa [#allocation7], 1 }
 0x568   :  { %1077 = vsyncpa [#allocation7 + $0x1], 1 }
 0x569   :  { %1078 = vsyncpa [#allocation10], 1 }
 0x56a   :  { %1080 = vsyncpa [#allocation10 + $0x1], 1 }
 0x56b   :  { %1081 = vsyncpa [#allocation13], 1 }
 0x56c   :  { %1082 = vsyncpa [#allocation8], 1 }
 0x56d   :  { %1084 = vsyncpa [#allocation8 + $0x1], 1 }

// kernel: tpu_custom_call.1
= control target key start
LH: loop header
LB: loop body
LE: loop exit
PB: predicated region body
PF: predicated region fallthrough
CT: control target
= control target key end

     0   :  { %s1974_s0 = inlined_call_operand.hbm [shape: bf16[2,8,32], index: 0, kind: input, shape index: {}]   ;;  %s1975_s1 = inlined_call_operand.hbm [shape: bf16[2,8,32], index: 1, kind: input, shape index: {}]   ;;  %s1976_s2 = inlined_call_operand.hbm [shape: bf16[32,32], index: 2, kind: input, shape index: {}]   ;;  %s1977_s3 = inlined_call_operand.vmem [shape: f32[1,32], index: 3, kind: input, shape index: {}]   ;;  %s1978_s4 = inlined_call_operand.hbm [shape: bf16[32,64], index: 4, kind: input, shape index: {}]   ;;  %s1979_s5 = inlined_call_operand.vmem [shape: f32[1,64], index: 5, kind: input, shape index: {}]   ;;  %s1980_s6 = inlined_call_operand.hbm [shape: bf16[4,8,32], index: 6, kind: input, shape index: {}]   ;;  %s1981_s7 = inlined_call_operand.vmem [shape: f32[1,32], index: 7, kind: input, shape index: {}]   ;;  %s1982_s8 = inlined_call_operand.hbm [shape: f32[2,8,32], index: 8, kind: output, shape index: {}]  }
   0x1   :  { %1988 = sst [smem:[#allocation27_spill]] %s1976_s2 }
   0x2   :  { %1989 = sst [smem:[#allocation28_spill]] %s1978_s4 }
   0x3   :  { %1990 = sst [smem:[#allocation29_spill]] %s1980_s6 }
   0x4   :  { %13 = vsyncpa [#allocation7], 0 }
   0x5   :  { %15 = vsyncpa [#allocation7 + $0x1], 0 }
   0x6   :  { %16 = vsyncpa [#allocation10], 0 }
   0x7   :  { %18 = vsyncpa [#allocation10 + $0x1], 0 }
   0x8   :  { %19 = vsyncpa [#allocation13], 0 }
   0x9   :  { %20 = vsyncpa [#allocation8], 0 }
   0xa   :  { %22 = vsyncpa [#allocation8 + $0x1], 0  ;;  %s1694_s27 = smov 0   ;;  %s1696_s28 = smov 0  }
   0xb   :  { %s1698_s29 = smov 0   ;;  %s1700_s30 = smov 0  }
   0xc   :  { %s1702_s9 = smov 0   ;;  %s1704_s10 = smov 0  }
   0xd LB: > { %1991 = sst [smem:[#allocation21_spill]] %s1612_s27  ;;  %s1725_s11 = sadd.s32 4294967295, %s1632_s10   ;;  %s1632_s10 = sphi %s1704_s10, %s28_s10   ;;  %s1628_s9 = sphi %s1702_s9, %s2011_s9   ;;  %s1624_s30 = sphi %s1700_s30, %s2010_s30   ;;  %s1620_s29 = sphi %s1698_s29, %s2009_s29   ;;  %s1616_s28 = sphi %s1696_s28, %s2013_s28   ;;  %s1612_s27 = sphi %s1694_s27, %s2012_s27  }
   0xe   : > { %1992 = sst [smem:[#allocation22_spill]] %s1620_s29  ;;  %p1194_p0 = scmp.ge.s32.totalorder %s1632_s10, 1 }
   0xf   : > { %1993 = sst [smem:[#allocation23_spill]] %s1628_s9  ;;  %p70_p1 = scmp.eq.s32.totalorder %s1725_s11, 0 }
  0x10   : > { %p262_p2 = scmp.lt.s32.totalorder %s1632_s10, 3  ;;  %s1994_s2 = sld [smem:[#allocation27_spill]] }
  0x11   : > { %s1634_s16 = smov [#allocation11]   ;;  %p1198_p6 = scmp.ge.s32.totalorder %s1632_s10, 2 }
  0x12   : > { %p1733_p3 = pnand %p1194_p0, %p262_p2  ;;  %s275_s17 = sshll.u32 %s1634_s16, 4  ;;  %s276_s17 = int_to_ptr.vmem [resolvable:$true] %s275_s17 }
  0x13   : > { %s1997_s4 = sld [smem:[#allocation28_spill]]  ;;  %s1635_s22 = smov 64  }
  0x14   : > { %p1266_p4 = pneg %p1733_p3  ;;  %s1636_s23 = smov 4  }
  0x15   : > { %s1637_s24 = smov [#allocation12]   ;;  %s1998_s6 = sld [smem:[#allocation29_spill]] }
  0x16   : > { %s273_s14 = sshll.u32 %s1994_s2, 4  ;;  %p1741_p5 = pnand %p1266_p4, %p70_p1  ;;  %s274_s14 = int_to_ptr.hbm [resolvable:$true] %s273_s14 }
  0x17   : > { %s292_s25 = sshll.u32 %s1637_s24, 4  ;;  %s1638_s16 = smov [#allocation14]   ;;  %s293_s25 = int_to_ptr.vmem [resolvable:$true] %s292_s25 }
  0x18   : > { %1269 = dma.hbm_to_vmem [thread:$0]  (!%p1741_p5), %s274_s14, 256, %s276_s17, [#allocation10], %s1635_s22, %s1635_s22, %s1636_s23  }
  0x19   : > { %s290_s21 = sshll.u32 %s1997_s4, 4  ;;  %s309_s19 = sshll.u32 %s1638_s16, 4  ;;  %s291_s21 = int_to_ptr.hbm [resolvable:$true] %s290_s21  ;;  %s310_s19 = int_to_ptr.vmem [resolvable:$true] %s309_s19 }
  0x1a   : > { %1272 = dma.hbm_to_vmem [thread:$0]  (!%p1741_p5), %s291_s21, 256, %s293_s25, [#allocation13], %s1635_s22, %s1635_s22, %s1636_s23  }
  0x1b   : > { %s307_s13 = sshll.u32 %s1998_s6, 4  ;;  %s1193_s14 = sadd.s32 4294967294, %s1632_s10   ;;  %s308_s13 = int_to_ptr.hbm [resolvable:$true] %s307_s13 }
  0x1c   : > { %1275 = dma.hbm_to_vmem [thread:$0]  (!%p1741_p5), %s308_s13, 256, %s310_s19, [#allocation13], %s1635_s22, %s1635_s22, %s1636_s23  }
  0x1d   : > { %s47_s17 = sadd.s32 1, %s1628_s9  ;;  %s56_s20 = sadd.s32 1, %s1620_s29 }
  0x1e   : > { %p49_p7 = scmp.ge.s32.totalorder %s47_s17, 2  ;;  %p63_p8 = scmp.ne.s32.totalorder %s1620_s29, %s1616_s28 }
  0x1f   : > { %p64_p9 = scmp.eq.s32.totalorder %s1632_s10, 0  ;;  %p69_p10 = scmp.ne.s32.totalorder %s1616_s28, %s1612_s27 }
  0x20   : > { %s2015_s17 = smov (%p49_p7, %s47_s17), 0  ;;  %p249_p13 = scmp.eq.s32.totalorder %s1725_s11, 1 }
  0x21   : > { %1999 = sst [smem:[#allocation24_spill]] %s2015_s17  ;;  %p1768_p11 = por %p64_p9, %p63_p8 }
  0x22   : > { %p1774_p12 = por %p70_p1, %p69_p10  ;;  %s51_s22 = ssub.s32 %s1628_s9, %s2015_s17 }
  0x23   : > { %p54_p0 = scmp.eq.s32.totalorder %s51_s22, 0  ;;  %p255_p2 = scmp.eq.s32.totalorder %s1193_s14, 1 }
  0x24   : > { %p1781_p4 = por %p249_p13, %p63_p8  ;;  %p1290_p5 = scmp.lt.s32.totalorder %s1632_s10, 2 }
  0x25   : > { %s1787_s24 = scalar_select %p54_p0, %s1620_s29, %s56_s20  }
  0x26   : > { %p1789_p7 = por %p255_p2, %p69_p10  ;;  %s326_s26 = sand.u32 1, %s1620_s29  }
  0x27   : > { %2003 = sst [smem:[#allocation25_spill]] %s1787_s24  ;;  %s1199_s12 = sshll.u32 %s326_s26, 2 }
  0x28   : > { %s2004_s25 = scalar_select %p1789_p7, 1, 0 }
  0x29   : > { %s1200_s13 = sshll.u32 %s1628_s9, 2  ;;  %s330_s14 = scalar_lea.vmem [#allocation6], %s1199_s12 }
  0x2a   : > { %2005 = sst [smem:[#allocation26_spill]] %s2004_s25  ;;  %s335_s22 = scalar_lea.hbm %s1974_s0, %s1200_s13 }
  0x2b   : > { %s339_s2 = sshll.u32 %s330_s14, 4  ;;  %s337_s4 = sshll.u32 %s335_s22, 4  ;;  %s340_s2 = int_to_ptr.vmem [resolvable:$true] %s339_s2  ;;  %s338_s4 = int_to_ptr.hbm [resolvable:$true] %s337_s4 }
  0x2c   : > { %p1277_p8 = pnand %p1290_p5, %p1768_p11  ;;  %s355_s17 = scalar_lea.hbm %s1975_s1, %s1200_s13 }
  0x2d   : > { %s346_s24 = sand.u32 1, %s1632_s10   ;;  %s327_s25 = scalar_lea.sflag [#allocation7], %s326_s26 }
  0x2e   : > { %1279 = dma.hbm_to_vmem [thread:$0]  (!%p1277_p8), %s338_s4, 64, %s340_s2, %s327_s25  }
  0x2f   : > { %s357_s29 = sshll.u32 %s355_s17, 4  ;;  %s350_s9 = scalar_lea.vmem [#allocation9], %s1199_s12  ;;  %s358_s29 = int_to_ptr.hbm [resolvable:$true] %s357_s29 }
  0x30   : > { %s359_s27 = sshll.u32 %s350_s9, 4  ;;  %s347_s16 = scalar_lea.sflag [#allocation10], %s346_s24  ;;  %s360_s27 = int_to_ptr.vmem [resolvable:$true] %s359_s27 }
  0x31   : > { %1282 = dma.hbm_to_vmem [thread:$0]  (!%p1277_p8), %s358_s29, 64, %s360_s27, %s347_s16  }
  0x32   : > { %368 = sbr.rel (%p1733_p3) target bundleno = 1366 (0x556), region = 52  ;;  %s1807_s21 = sand.u32 (!%p1733_p3), 1, %s1616_s28  }
  0x33   : > { %s1204_s6 = sshll.u32 (!%p1733_p3), %s1807_s21, 2  ;;  %s371_s13 = scalar_lea.sflag (!%p1733_p3), [#allocation7], %s1807_s21 }
  0x34   : > { %s374_s26 = scalar_lea.vmem (!%p1733_p3), [#allocation6], %s1204_s6 }
  0x37   : > { %1591 = dma.done.wait (%p1774_p12), %s371_s13, 64  }
  0x38   : > { %1593 = vsyncadd (%p1774_p12), %s371_s13, 4294967232  ;;  %s380_s2 = sand.u32 1, %s1725_s11   ;;  %s384_s27 = scalar_lea.vmem [#allocation9], %s1204_s6 }
  0x39   : > { %s381_s4 = scalar_lea.sflag [#allocation10], %s380_s2 }
  0x3a   : > { %1595 = dma.done.wait (%p1774_p12), %s381_s4, 64  }
  0x3b   : > { %1597 = vsyncadd (%p1774_p12), %s381_s4, 4294967232 }
  0x3c   : > { %1599 = dma.done.wait (%p70_p1), [#allocation10], 256  }
  0x3d   : > { %1601 = vsyncadd (%p70_p1), [#allocation10], 4294967040 }
  0x3e   : > { %1603 = dma.done.wait (%p70_p1), [#allocation13], 512  }
  0x3f   : > { %1605 = vsyncadd (%p70_p1), [#allocation13], 4294966784  ;;  %v1245_v0 = vld [vmem:[#allocation11 + $0x8] sm:$0xff]  ;;  %v1247_v1 = vld [vmem:[#allocation12 + $0x8] sm:$0xff]  ;;  %vm466_vm0 = vcmask 261120   ;;  %vm484_vm1 = vcmask 257024   ;;  %v544_v37 = vlaneseq }
  0x40   : > { %v1244_v2 = vld [vmem:[#allocation11] sm:$0xff]  ;;  %476 = vmatpush.bf16.msra.mxu0 %v1245_v0  ;;  %536 = vmatpush.bf16.msra.mxu1 %v1247_v1  ;;  %v1246_v3 = vld [vmem:[#allocation12] sm:$0xff]  ;;  %v505_v5 = vld [vmem:[%s384_s27] sm:$0xf]  ;;  %vm495_vm2 = vcmask 64512   ;;  %s1639_s17 = smov 96  }
  0x41   : > { %v445_v4 = vld [vmem:[%s374_s26] sm:$0xf]  ;;  %v1361_v6 = vld [vmem:[%s1977_s3] ss:$0 sm:$0xff]  ;;  %s1640_s18 = smov 120   ;;  %s1641_s24 = smov 104  }
  0x42   : > { %v1362_v7 = vld [vmem:[%s1979_s5] ss:$0 sm:$0xff]  ;;  %s1642_s25 = smov 112   ;;  %vm616_vm3 = vcmask 1043456   ;;  %v1850_v38 = vshrl.u32 %v544_v37, 7  ;;  %v1852_v39 = vand.u32 127, %v544_v37 }
  0x43   : > { %vm486_vm5 = vcmask 7168   ;;  %v1643_v45 = vmov -inf   ;;  %v1644_v46 = vmov 0   ;;  %v1645_v47 = vmov 0.0   ;;  %s1646_s12 = smov 72   ;;  %s1647_s19 = smov 80  }
  0x44   : > { %477 = vmatpush.bf16.msra.mxu0 %v1244_v2  ;;  %537 = vmatpush.bf16.msra.mxu1 %v1246_v3  ;;  %vm552_vm4 = vcmp.le.s32.totalorder %v1852_v39, %v1850_v38  ;;  %487 = vst.msk [vmem:[#allocation3] sm:$0xff] %vm486_vm5, %v1643_v45  ;;  %s1648_s22 = smov 88   ;;  %s1209_s14 = sshll.u32 %s1807_s21, 3 }
  0x45   : > { %488 = vst.msk [vmem:[#allocation3 + $0x8] sm:$0xff] %vm486_vm5, %v1643_v45  ;;  %1358 = vset.pattern.permute.xlu0 %v1644_v46  ;;  %1359 = vset.pattern.permute.xlu1 %v1644_v46  ;;  %s1241_s20 = sshll.u32 %s1624_s30, 3  ;;  %s437_s4 = scalar_lea.vmem [#allocation15], %s1209_s14 }
  0x46   : > { %489 = vst.msk [vmem:[#allocation3 + $0x10] sm:$0xff] %vm486_vm5, %v1643_v45  ;;  %1360 = vset.pattern.permute.xlu2 %v1644_v46  ;;  %s1052_s13 = scalar_lea.hbm %s1982_s8, %s1241_s20  ;;  %s1054_s27 = sshll.u32 %s437_s4, 4  ;;  %s1055_s27 = int_to_ptr.vmem [resolvable:$true] %s1054_s27 }
  0x47   : > { %1218 = vmatmul.msk.bf16.vlgmr.msra.gmra.mxu0 %vm466_vm0, %v445_v4  ;;  %1227 = vmatmul.msk.bf16.vlgmr.msra.gmra.mxu1 %vm466_vm0, %v505_v5  ;;  %490 = vst.msk [vmem:[#allocation3 + $0x18] sm:$0xff] %vm486_vm5, %v1643_v45  ;;  %s1056_s29 = sshll.u32 %s1052_s13, 4  ;;  %s1041_s30 = scalar_lea.sflag [#allocation8], %s1807_s21  ;;  %s1057_s29 = int_to_ptr.hbm [resolvable:$true] %s1056_s29 }
  0x48   : > { %493 = vst.msk [vmem:[#allocation4 + $0x10] sm:$0xff] %vm486_vm5, %v1645_v47  ;;  %s1552_s9 = sshra.s32 %s1057_s29, 4  ;;  %s1553_s9 = int_to_ptr.hbm [resolvable:$true] %s1552_s9 }
  0x49   : > { %491 = vst.msk [vmem:[#allocation4] sm:$0xff] %vm486_vm5, %v1645_v47  ;;  %s1554_s11 = scalar_lea.hbm %s1553_s9, 8  ;;  %p1559_p10 = scmp.lt.s32.totalorder %s1553_s9, %s1982_s8 }
  0x4a   : > { %492 = vst.msk [vmem:[#allocation4 + $0x8] sm:$0xff] %vm486_vm5, %v1645_v47  ;;  %p1555_p1 = scmp.ne.s32.totalorder %s1553_s9, %s1554_s11 }
  0x4b   : > { %494 = vst.msk [vmem:[#allocation4 + $0x18] sm:$0xff] %vm486_vm5, %v1645_v47  ;;  %v576_v53 = vld [vmem:[#allocation3] sm:$0xff] }
  0x4c   : > { %496 = vst.msk [vmem:[#allocation5] sm:$0xff] %vm495_vm2, %v1645_v47  ;;  %p1556_p3 = pnand %p1555_p1, %p1781_p4 }
  0x4d   : > { %497 = vst.msk [vmem:[#allocation5 + $0x8] sm:$0xff] %vm495_vm2, %v1645_v47  ;;  %v753_v59 = vld [vmem:[#allocation3 + $0x10] sm:$0xff] }
  0x4e   : > { %498 = vst.msk [vmem:[#allocation5 + $0x10] sm:$0xff] %vm495_vm2, %v1645_v47  ;;  %p1557_p9 = pneg %p1556_p3 }
  0x4f   : > { %499 = vst.msk [vmem:[#allocation5 + $0x18] sm:$0xff] %vm495_vm2, %v1645_v47 }
  0xc4   : > { %v479_v8 = vpop.f32.mrf.mxu0  ;;  %v539_v9 = vpop.f32.mrf.mxu1 }
  0xc5   : > { %v480_v10 = vadd.f32 %v1361_v6, %v479_v8  ;;  %v540_v11 = vadd.f32 %v1362_v7, %v539_v9 }
  0xc7   : > { %v483_v12 = vpack.c.bf16 %v480_v10, %v480_v10  ;;  %v543_v13 = vpack.c.bf16 %v540_v11, %v540_v11 }
  0xc9   : > { %485 = vst.msk [vmem:[#allocation2] sm:$0xf] %vm484_vm1, %v483_v12  ;;  %v609_v14 = vunpack.c.l.b16 %v543_v13  ;;  %v559_v15 = vsel %vm495_vm2, %v543_v13, 0 }
  0xca   : > { %568 = vmatpush.bf16.xpose.msra.mxu2 %v559_v15 }
  0xcb   : > { %v1837_v16 = vpack.c.b16 %v609_v14, %v609_v14 }
  0xcc   : > { %v481_v17 = vpop.f32.mrf.mxu0  ;;  %v541_v18 = vpop.f32.mrf.mxu1 }
  0xcd   : > { %611 = vrot.lane.b32.xlu1 %v1837_v16, %s1639_s17 }
  0xd0   : > { %v553_v19 = vld [vmem:[#allocation2] sm:$0xf] }
  0xd1   : > { %v636_v20 = vld [vmem:[#allocation2] sm:$0xf]  ;;  %1228 = vmatmul.msk.bf16.vlgmr.msra.gmra.mxu2 %vm495_vm2, %v553_v19 }
  0xd2   : > { %v638_v21 = vunpack.c.l.b16 %v636_v20  ;;  %v810_v23 = vld [vmem:[#allocation2] sm:$0xf] }
  0xd3   : > { %v723_v24 = vld [vmem:[#allocation2] sm:$0xf]  ;;  %v812_v25 = vunpack.c.l.b16 %v810_v23 }
  0xd4   : > { %v639_v22 = vpack.c.b16 %v638_v21, %v638_v21  ;;  %v725_v26 = vunpack.c.l.b16 %v723_v24 }
  0xd5   : > { %642 = vrot.lane.b32.xlu1 %v1837_v16, %s1640_s18  ;;  %v813_v27 = vpack.c.b16 %v812_v25, %v812_v25 }
  0xd6   : > { %640 = vrot.lane.b32.xlu2 %v639_v22, %s1640_s18  ;;  %v726_v28 = vpack.c.b16 %v725_v26, %v725_v26  ;;  %s1558_s18 = scalar_lea.hbm %s1982_s8, 16 }
  0xd7   : > { %p1560_p11 = scmp.lt.s32.totalorder %s1558_s18, %s1554_s11 }
  0xd9   : > { %p1561_p12 = por %p1560_p11, %p1559_p10 }
  0xdb   : > { %p1562_p13 = pnand %p1561_p12, %p1557_p9 }
  0xdd   : > { %816 = vrot.lane.b32.xlu1 %v1837_v16, %s1641_s24 }
  0xde   : > { %729 = vrot.lane.b32.xlu2 %v1837_v16, %s1642_s25 }
  0xe5   : > { %814 = vrot.lane.b32.xlu1 %v813_v27, %s1641_s24 }
  0xe6   : > { %727 = vrot.lane.b32.xlu2 %v726_v28, %s1642_s25  ;;  %v770_v28 = vld [vmem:[#allocation4 + $0x10] sm:$0xff] }
 0x130   : > { %v1844_v29 = vpop.permute.xlu2 %640 }
 0x138   : > { %v730_v30 = vpop.permute.xlu2 %729 }
 0x139   : > { %v735_v31 = vsel %vm495_vm2, %v730_v30, 0 }
 0x13a   : > { %744 = vmatpush.bf16.xpose.msrb.mxu1 %v735_v31 }
 0x13f   : > { %v612_v32 = vpop.permute.xlu1 %611 }
 0x140   : > { %v728_v33 = vpop.permute.xlu2 %727  ;;  %v618_v34 = vsel %vm616_vm3, %v612_v32, 0  ;;  %v600_v32 = vld [vmem:[#allocation5] sm:$0xff] }
 0x141   : > { %1232 = vmatmul.msk.bf16.vlgmr.msrb.gmra.mxu1 %vm495_vm2, %v728_v33  ;;  %627 = vmatpush.bf16.msra.mxu3 %v618_v34 }
 0x147   : > { %v643_v35 = vpop.permute.xlu1 %642 }
 0x148   : > { %v648_v36 = vsel %vm495_vm2, %v643_v35, 0 }
 0x149   : > { %657 = vmatpush.bf16.xpose.msrb.mxu3 %v648_v36  ;;  %v666_v36 = vld [vmem:[#allocation3 + $0x8] sm:$0xff] }
 0x14f   : > { %v817_v57 = vpop.permute.xlu1 %816 }
 0x150   : > { %v822_v4 = vsel %vm495_vm2, %v817_v57, 0 }
 0x154   : > { %v570_v40 = vpop.f32.mrf.mxu2 }
 0x155   : > { %v574_v41 = vmul.f32 0.35355338, %v570_v40  ;;  %v840_v40 = vld [vmem:[#allocation3 + $0x18] sm:$0xff] }
 0x157   : > { %v575_v42 = vsel %vm552_vm4, %v574_v41, -inf  ;;  %v815_v58 = vpop.permute.xlu1 %814 }
 0x158   : > { %v577_v43 = vsel %vm495_vm2, %v575_v42, -inf }
 0x159   : > { %578 = vmax.xlane.f32.xlu0 %v577_v43 }
 0x15c   : > { %v572_v44 = vpop.f32.mrf.mxu2 }
 0x1be   : > { %v746_v48 = vpop.f32.mrf.mxu1 }
 0x1bf   : > { %v750_v49 = vmul.f32 0.35355338, %v746_v48 }
 0x1c1   : > { %v751_v50 = vsel %vm552_vm4, %v750_v49, -inf }
 0x1c2   : > { %v754_v51 = vsel %vm495_vm2, %v751_v50, -inf }
 0x1c3   : > { %755 = vmax.xlane.f32.xlu1 %v754_v51 }
 0x1c6   : > { %v748_v52 = vpop.f32.mrf.mxu1 }
 0x1cc   : > { %v579_v54 = vpop.xlane.xlu0 %578 }
 0x1cd   : > { %v580_v55 = vmax.f32 %v576_v53, %v579_v54 }
 0x1cf   : > { %v581_v56 = vsub.f32 %v576_v53, %v580_v55  ;;  %635 = vst.msk [vmem:[#allocation3] sm:$0xff] %vm486_vm5, %v580_v55  ;;  %586 = vperm.xlu0 %1358, %v580_v55  }
 0x1d1   : > { %v582_v10 = vmul.f32 1.442695, %v581_v56 }
 0x236   : > { %v756_v60 = vpop.xlane.xlu1 %755 }
 0x237   : > { %v757_v61 = vmax.f32 %v753_v59, %v756_v60 }
 0x239   : > { %v758_v62 = vsub.f32 %v753_v59, %v757_v61  ;;  %809 = vst.msk [vmem:[#allocation3 + $0x10] sm:$0xff] %vm486_vm5, %v757_v61  ;;  %763 = vperm.xlu1 %1359, %v757_v61  }
 0x23b   : > { %v759_v25 = vmul.f32 1.442695, %v758_v62 }
 0x241   : > { %873 = vrot.lane.b32.xlu1 %v1837_v16, %s1646_s12  ;;  %v587_v63 = vpop.permute.xlu0 %586 }
 0x242   : > { %v589_v0 = vsub.f32 %v575_v42, %v587_v63 }
 0x244   : > { %v590_v1 = vmul.f32 1.442695, %v589_v0 }
 0x246   : > { %1364 = vpow2.f32 %v590_v1 }
 0x24c   : > { %v1879_v2 = vpop.eup %1364 }
 0x24d   : > { %v607_v3 = vpack.c.bf16 %v1879_v2, %v1879_v2  ;;  %v594_v47 = vsel %vm495_vm2, %v1879_v2, 0.0 }
 0x24f   : > { %1229 = vmatmul.msk.bf16.vlgmr.msra.gmra.mxu3 %vm495_vm2, %v607_v3 }
 0x250   : > { %831 = vmatpush.bf16.xpose.msra.mxu3 %v822_v4 }
 0x25f   : > { %1230 = vmatmul.msk.bf16.vlgmr.msrb.gmra.mxu3 %vm495_vm2, %v1844_v29 }
 0x26f   : > { %1234 = vmatmul.msk.bf16.vlgmr.msra.gmra.mxu3 %vm495_vm2, %v815_v58 }
 0x2ab   : > { %v764_v5 = vpop.permute.xlu1 %763 }
 0x2ac   : > { %v766_v6 = vsub.f32 %v751_v50, %v764_v5  ;;  %v592_v5 = vld [vmem:[#allocation4] sm:$0xff] }
 0x2ae   : > { %v767_v7 = vmul.f32 1.442695, %v766_v6 }
 0x2b0   : > { %1366 = vpow2.f32 %v767_v7 }
 0x2b1   : > { %1368 = vpow2.f32 %v582_v10 }
 0x2b2   : > { %1370 = vpow2.f32 %v759_v25 }
 0x2b3   : > { %v874_v26 = vpop.permute.xlu1 %873 }
 0x2b4   : > { %v879_v52 = vsel %vm616_vm3, %v874_v26, 0  ;;  %v778_v26 = vld [vmem:[#allocation5 + $0x10] sm:$0xff] }
 0x2b6   : > { %v1367_v8 = vpop.eup %1366 }
 0x2b7   : > { %v772_v9 = vsel %vm495_vm2, %v1367_v8, 0.0  ;;  %v1889_v11 = vpop.eup %1368  ;;  %v785_v46 = vpack.c.bf16 %v1367_v8, %v1367_v8 }
 0x2b8   : > { %773 = vadd.xlane.f32.xlu1 %v772_v9  ;;  %v1371_v27 = vpop.eup %1370  ;;  %v593_v6 = vmul.f32 %v1889_v11, %v592_v5 }
 0x2b9   : > { %v771_v29 = vmul.f32 %v1371_v27, %v770_v28 }
 0x2d1   : > { %603 = vperm.xlu1 %1359, %v1889_v11  }
 0x2d2   : > { %v629_v12 = vpop.f32.mrf.mxu3 }
 0x2da   : > { %v631_v13 = vpop.f32.mrf.mxu3 }
 0x2db   : > { %v683_v13 = vld [vmem:[#allocation4 + $0x8] sm:$0xff] }
 0x2e2   : > { %v659_v14 = vpop.f32.mrf.mxu3 }
 0x2e3   : > { %v663_v15 = vmul.f32 0.35355338, %v659_v14 }
 0x2e5   : > { %v664_v17 = vsel %vm552_vm4, %v663_v15, -inf }
 0x2e6   : > { %v667_v18 = vsel %vm495_vm2, %v664_v17, -inf }
 0x2e7   : > { %668 = vmax.xlane.f32.xlu2 %v667_v18  ;;  %v978_v18 = vld [vmem:[#allocation14 + $0x8] sm:$0xf] }
 0x2ea   : > { %v661_v19 = vpop.f32.mrf.mxu3 }
 0x2eb   : > { %v983_v19 = vsel %vm616_vm3, %v978_v18, 0 }
 0x2ec   : > { %992 = vmatpush.bf16.msrb.mxu3 %v983_v19 }
 0x2f2   : > { %v833_v20 = vpop.f32.mrf.mxu3 }
 0x2f3   : > { %v837_v21 = vmul.f32 0.35355338, %v833_v20 }
 0x2f5   : > { %v838_v22 = vsel %vm552_vm4, %v837_v21, -inf  ;;  %v857_v21 = vld [vmem:[#allocation4 + $0x18] sm:$0xff] }
 0x2f6   : > { %v841_v23 = vsel %vm495_vm2, %v838_v22, -inf }
 0x2f7   : > { %842 = vmax.xlane.f32.xlu0 %v841_v23 }
 0x2fa   : > { %v835_v24 = vpop.f32.mrf.mxu3 }
 0x30b   : > { %786 = vrot.lane.b32.xlu0 %v1837_v16, %s1647_s19 }
 0x32b   : > { %v774_v30 = vpop.xlane.xlu1 %773 }
 0x32c   : > { %v775_v31 = vadd.f32 %v774_v30, %v771_v29 }
 0x32e   : > { %776 = vst.msk [vmem:[#allocation4 + $0x10] sm:$0xff] %vm486_vm5, %v775_v31  ;;  %v691_v31 = vld [vmem:[#allocation5 + $0x8] sm:$0xff] }
 0x335   : > { %v966_v1 = vld [vmem:[#allocation4 + $0x10] sm:$0xff] }
 0x343   : > { %v604_v33 = vpop.permute.xlu1 %603 }
 0x344   : > { %v606_v34 = vmul.f32 %v604_v33, %v600_v32 }
 0x346   : > { %v633_v35 = vadd.f32 %v629_v12, %v606_v34  ;;  %v865_v34 = vld [vmem:[#allocation5 + $0x18] sm:$0xff] }
 0x348   : > { %634 = vst.msk [vmem:[#allocation5] sm:$0xff] %vm495_vm2, %v633_v35 }
 0x35a   : > { %v669_v37 = vpop.xlane.xlu2 %668 }
 0x35b   : > { %v670_v38 = vmax.f32 %v666_v36, %v669_v37 }
 0x35d   : > { %v671_v39 = vsub.f32 %v666_v36, %v670_v38  ;;  %722 = vst.msk [vmem:[#allocation3 + $0x8] sm:$0xff] %vm486_vm5, %v670_v38  ;;  %676 = vperm.xlu2 %1360, %v670_v38  }
 0x35f   : > { %v672_v0 = vmul.f32 1.442695, %v671_v39 }
 0x365   : > { %699 = vrot.lane.b32.xlu2 %v1837_v16, %s1648_s22 }
 0x36a   : > { %v843_v41 = vpop.xlane.xlu0 %842 }
 0x36b   : > { %v844_v42 = vmax.f32 %v840_v40, %v843_v41 }
 0x36d   : > { %v845_v43 = vsub.f32 %v840_v40, %v844_v42  ;;  %896 = vst.msk [vmem:[#allocation3 + $0x18] sm:$0xff] %vm486_vm5, %v844_v42  ;;  %850 = vperm.xlu2 %1360, %v844_v42  }
 0x36f   : > { %v846_v62 = vmul.f32 1.442695, %v845_v43 }
 0x37d   : > { %v787_v44 = vpop.permute.xlu0 %786 }
 0x37e   : > { %v792_v45 = vsel %vm616_vm3, %v787_v44, 0 }
 0x37f   : > { %801 = vmatpush.bf16.msrb.mxu2 %v792_v45 }
 0x382   : > { %1233 = vmatmul.msk.bf16.vlgmr.msrb.gmra.mxu2 %vm495_vm2, %v785_v46 }
 0x396   : > { %595 = vadd.xlane.f32.xlu2 %v594_v47  ;;  %v910_v47 = vld [vmem:[#allocation14] sm:$0xf] }
 0x3b7   : > { %v677_v48 = vpop.permute.xlu2 %676 }
 0x3b8   : > { %v679_v16 = vsub.f32 %v664_v17, %v677_v48  ;;  %v950_v48 = vsel %vm616_vm3, %v910_v47, 0 }
 0x3b9   : > { %959 = vmatpush.bf16.msra.mxu2 %v950_v48 }
 0x3ba   : > { %v680_v49 = vmul.f32 1.442695, %v679_v16  ;;  %v902_v16 = vld [vmem:[#allocation5] sm:$0xff] }
 0x3bc   : > { %1372 = vpow2.f32 %v680_v49 }
 0x3bf   : > { %v700_v50 = vpop.permute.xlu2 %699 }
 0x3c0   : > { %v705_v51 = vsel %vm616_vm3, %v700_v50, 0 }
 0x3c1   : > { %714 = vmatpush.bf16.msrb.mxu0 %v705_v51 }
 0x3c2   : > { %v1373_v53 = vpop.eup %1372 }
 0x3c3   : > { %v685_v54 = vsel %vm495_vm2, %v1373_v53, 0.0  ;;  %v698_v55 = vpack.c.bf16 %v1373_v53, %v1373_v53 }
 0x3c4   : > { %686 = vadd.xlane.f32.xlu0 %v685_v54  ;;  %v1012_v54 = vld [vmem:[#allocation14 + $0xc] sm:$0xf] }
 0x3c5   : > { %888 = vmatpush.bf16.msra.mxu0 %v879_v52  ;;  %v924_v52 = vld [vmem:[#allocation14 + $0x4] sm:$0xf] }
 0x3c6   : > { %1231 = vmatmul.msk.bf16.vlgmr.msrb.gmra.mxu0 %vm495_vm2, %v698_v55  ;;  %v931_v53 = vsel %vm616_vm3, %v924_v52, 0  ;;  %v1017_v55 = vsel %vm616_vm3, %v1012_v54, 0 }
 0x3c7   : > { %v851_v56 = vpop.permute.xlu2 %850  ;;  %940 = vmatpush.bf16.msra.mxu1 %v931_v53 }
 0x3c8   : > { %v853_v57 = vsub.f32 %v838_v22, %v851_v56 }
 0x3c9   : > { %1026 = vmatpush.bf16.msrb.mxu0 %v1017_v55 }
 0x3ca   : > { %v854_v58 = vmul.f32 1.442695, %v853_v57 }
 0x3cc   : > { %1374 = vpow2.f32 %v854_v58 }
 0x3cd   : > { %1376 = vpow2.f32 %v846_v62 }
 0x3ce   : > { %1378 = vpow2.f32 %v672_v0 }
 0x3cf   : > { %1380 = vrcp.f32 %v966_v1 }
 0x3d2   : > { %v1375_v59 = vpop.eup %1374 }
 0x3d3   : > { %v872_v60 = vpack.c.bf16 %v1375_v59, %v1375_v59  ;;  %v859_v61 = vsel %vm495_vm2, %v1375_v59, 0.0  ;;  %v1377_v63 = vpop.eup %1376 }
 0x3d4   : > { %860 = vadd.xlane.f32.xlu2 %v859_v61  ;;  %v1379_v2 = vpop.eup %1378  ;;  %v858_v22 = vmul.f32 %v1377_v63, %v857_v21 }
 0x3d5   : > { %v1381_v3 = vpop.eup %1380  ;;  %v684_v14 = vmul.f32 %v1379_v2, %v683_v13 }
 0x3d6   : > { %1235 = vmatmul.msk.bf16.vlgmr.msra.gmra.mxu0 %vm495_vm2, %v872_v60 }
 0x3d8   : > { %781 = vperm.xlu0 %1358, %v1371_v27  }
 0x3e0   : > { %868 = vperm.xlu0 %1358, %v1377_v63  }
 0x3ec   : > { %694 = vperm.xlu2 %1360, %v1379_v2  }
 0x3f4   : > { %972 = vperm.xlu2 %1360, %v1381_v3  }
 0x405   : > { %v803_v4 = vpop.f32.mrf.mxu2 }
 0x409   : > { %v596_v7 = vpop.xlane.xlu2 %595 }
 0x40a   : > { %v597_v8 = vadd.f32 %v596_v7, %v593_v6 }
 0x40c   : > { %599 = vst.msk [vmem:[#allocation4] sm:$0xff] %vm486_vm5, %v597_v8  ;;  %v1363_v8 = vld [vmem:[%s1981_s7] ss:$0 sm:$0xff] }
 0x40d   : > { %v805_v9 = vpop.f32.mrf.mxu2 }
 0x413   : > { %v900_v10 = vld [vmem:[#allocation4] sm:$0xff] }
 0x414   : > { %1382 = vrcp.f32 %v900_v10 }
 0x41a   : > { %v1383_v12 = vpop.eup %1382 }
 0x41b   : > { %905 = vperm.xlu1 %1359, %v1383_v12  }
 0x437   : > { %v687_v15 = vpop.xlane.xlu0 %686 }
 0x438   : > { %v688_v17 = vadd.f32 %v687_v15, %v684_v14 }
 0x43a   : > { %689 = vst.msk [vmem:[#allocation4 + $0x8] sm:$0xff] %vm486_vm5, %v688_v17 }
 0x441   : > { %v912_v11 = vld [vmem:[#allocation4 + $0x8] sm:$0xff] }
 0x442   : > { %1384 = vrcp.f32 %v912_v11 }
 0x443   : > { %v716_v20 = vpop.f32.mrf.mxu0 }
 0x447   : > { %v861_v23 = vpop.xlane.xlu2 %860 }
 0x448   : > { %v1385_v24 = vpop.eup %1384  ;;  %v862_v25 = vadd.f32 %v861_v23, %v858_v22 }
 0x449   : > { %918 = vperm.xlu0 %1358, %v1385_v24  }
 0x44a   : > { %863 = vst.msk [vmem:[#allocation4 + $0x18] sm:$0xff] %vm486_vm5, %v862_v25  ;;  %v782_v28 = vpop.permute.xlu0 %781 }
 0x44b   : > { %v718_v27 = vpop.f32.mrf.mxu0  ;;  %v784_v29 = vmul.f32 %v782_v28, %v778_v26 }
 0x44d   : > { %v807_v30 = vadd.f32 %v803_v4, %v784_v29 }
 0x44f   : > { %808 = vst.msk [vmem:[#allocation5 + $0x10] sm:$0xff] %vm495_vm2, %v807_v30  ;;  %v695_v32 = vpop.permute.xlu2 %694 }
 0x450   : > { %v697_v33 = vmul.f32 %v695_v32, %v691_v31 }
 0x451   : > { %v1000_v35 = vld [vmem:[#allocation4 + $0x18] sm:$0xff] }
 0x452   : > { %v720_v36 = vadd.f32 %v716_v20, %v697_v33  ;;  %v869_v38 = vpop.permute.xlu0 %868  ;;  %1386 = vrcp.f32 %v1000_v35 }
 0x453   : > { %v890_v37 = vpop.f32.mrf.mxu0  ;;  %v871_v39 = vmul.f32 %v869_v38, %v865_v34 }
 0x454   : > { %721 = vst.msk [vmem:[#allocation5 + $0x8] sm:$0xff] %vm495_vm2, %v720_v36 }
 0x455   : > { %v894_v40 = vadd.f32 %v890_v37, %v871_v39 }
 0x456   : > { %v969_v41 = vld [vmem:[#allocation5 + $0x10] sm:$0xff] }
 0x457   : > { %895 = vst.msk [vmem:[#allocation5 + $0x18] sm:$0xff] %vm495_vm2, %v894_v40  ;;  %v973_v42 = vpop.permute.xlu2 %972 }
 0x458   : > { %v1387_v43 = vpop.eup %1386  ;;  %v975_v44 = vmul.f32 %v973_v42, %v969_v41 }
 0x459   : > { %1006 = vperm.xlu1 %1359, %v1387_v43  }
 0x45a   : > { %v976_v45 = vpack.c.bf16 %v975_v44, %v975_v44 }
 0x45b   : > { %v892_v46 = vpop.f32.mrf.mxu0  ;;  %v915_v57 = vld [vmem:[#allocation5 + $0x8] sm:$0xff] }
 0x45c   : > { %1238 = vmatmul.msk.bf16.vlgmr.msrb.gmra.mxu3 %vm495_vm2, %v976_v45 }
 0x45e   : > { %v1003_v60 = vld [vmem:[#allocation5 + $0x18] sm:$0xff] }
 0x48d   : > { %v906_v49 = vpop.permute.xlu1 %905 }
 0x48e   : > { %v908_v50 = vmul.f32 %v906_v49, %v902_v16 }
 0x490   : > { %v909_v51 = vpack.c.bf16 %v908_v50, %v908_v50 }
 0x492   : > { %1237 = vmatmul.msk.bf16.vlgmr.msra.gmra.mxu2 %vm495_vm2, %v909_v51 }
 0x4bb   : > { %v919_v56 = vpop.permute.xlu0 %918 }
 0x4bc   : > { %v921_v58 = vmul.f32 %v919_v56, %v915_v57 }
 0x4be   : > { %v922_v59 = vpack.c.bf16 %v921_v58, %v921_v58 }
 0x4c0   : > { %1236 = vmatmul.msk.bf16.vlgmr.msra.gmra.mxu1 %vm495_vm2, %v922_v59 }
 0x4cb   : > { %v1007_v61 = vpop.permute.xlu1 %1006 }
 0x4cc   : > { %v1009_v62 = vmul.f32 %v1007_v61, %v1003_v60 }
 0x4ce   : > { %v1010_v63 = vpack.c.bf16 %v1009_v62, %v1009_v62 }
 0x4d0   : > { %1239 = vmatmul.msk.bf16.vlgmr.msrb.gmra.mxu0 %vm495_vm2, %v1010_v63 }
 0x4df   : > { %v994_v0 = vpop.f32.mrf.mxu3 }
 0x4e7   : > { %v996_v1 = vpop.f32.mrf.mxu3 }
 0x515   : > { %v961_v2 = vpop.f32.mrf.mxu2 }
 0x51d   : > { %v963_v3 = vpop.f32.mrf.mxu2 }
 0x53d   : > { %v942_v4 = vpop.f32.mrf.mxu1 }
 0x53e   : > { %v962_v6 = vadd.f32 %v961_v2, %v942_v4 }
 0x540   : > { %v998_v7 = vadd.f32 %v994_v0, %v962_v6 }
 0x545   : > { %v944_v5 = vpop.f32.mrf.mxu1 }
 0x54d   : > { %v1028_v9 = vpop.f32.mrf.mxu0 }
 0x54e   : > { %v1032_v10 = vadd.f32 %v1028_v9, %v998_v7 }
 0x550   : > { %v1037_v12 = vadd.f32 %v1363_v8, %v1032_v10 }
 0x552   : > { %1039 = vst.msk [vmem:[%s437_s4] sm:$0xff] %vm466_vm0, %v1037_v12 }
 0x553   : > { %1565 = shalt.err (!%p1562_p13)
}
 0x554   : > { %1264 = dma.vmem_to_hbm [thread:$0]  (%p1781_p4), %s1055_s27, 128, %s1057_s29, %s1041_s30  }
 0x555   : > { %v1030_v13 = vpop.f32.mrf.mxu0 }
 0x556 PF: > { %s2006_s21 = sld [smem:[#allocation21_spill]]  ;;  %p1284_p0 = pnand %p1198_p6, %p1789_p7 }
 0x558   : > { %p1285_p2 = pneg %p1284_p0 }
 0x55c   : > { %s1068_s19 = sand.u32 1, %s2006_s21  }
 0x55d   : > { %s1069_s22 = scalar_lea.sflag [#allocation8], %s1068_s19 }
 0x55e   : > { %1607 = dma.done.wait (%p1285_p2), %s1069_s22, 128  }
 0x55f   : > { %1609 = vsyncadd (%p1285_p2), %s1069_s22, 4294967168  ;;  %s28_s10 = sadd.s32 1, %s1632_s10   ;;  %s2008_s14 = sld [smem:[#allocation22_spill]] }
 0x560   : > { %p25_p5 = scmp.ge.s32.totalorder %s28_s10, 4   ;;  %s2009_s29 = sld [smem:[#allocation25_spill]] }
 0x561   : > { %s2010_s30 = sld [smem:[#allocation23_spill]]  ;;  %s2012_s27 = smov %s1616_s28 }
 0x562   : > { %s2011_s9 = sld [smem:[#allocation24_spill]]  ;;  %27 = sbr.rel (!%p25_p5) target bundleno = 13 (0xd), region = 152 }
 0x565   : > { %s2013_s28 = smov %s2008_s14 }
 0x567   :  { %1075 = vsyncpa [#allocation7], 1 }
 0x568   :  { %1077 = vsyncpa [#allocation7 + $0x1], 1 }
 0x569   :  { %1078 = vsyncpa [#allocation10], 1 }
 0x56a   :  { %1080 = vsyncpa [#allocation10 + $0x1], 1 }
 0x56b   :  { %1081 = vsyncpa [#allocation13], 1 }
 0x56c   :  { %1082 = vsyncpa [#allocation8], 1 }
 0x56d   :  { %1084 = vsyncpa [#allocation8 + $0x1], 1 }

</bundles_post_ra>
